<compile_context>
chip_gen: v7x
topology: tpu7x:2x2x1
jax: 0.10.0
libtpu: 0.0.40
codegen_flags: <defaults>
</compile_context>

<pallas_src>
import functools
import math

import jax
import jax.numpy as jnp
from jax.experimental import pallas as pl
from jax.experimental.pallas import tpu as pltpu

# ---- hyper-parameters (consistent with the module's constructor) ----
EMB = 32            # embeddingSize
HEADS = 4           # numberHeads
DH = EMB // HEADS   # dimsHead
FF = 4 * EMB        # forwardExp * embeddingSize
LAYERS = 2          # numberLayers
SRC_VOCAB = 50
MAX_LEN = 16
PAD_IDX = 0
LN_EPS = 1e-5       # PyTorch nn.LayerNorm default
NEG_INF = -1e20     # pad-key bias (matches reference masked_fill value)
CROSS_NEG = -2e20   # cross-batch bias: strictly more negative than NEG_INF
INV_SQRT_EMB = 1.0 / math.sqrt(EMB)   # reference scales energy by 1/sqrt(embeddingSize)
QKV_LANES = 128     # fused q|k|v output width, zero-padded 96 -> 128 lanes


# ----------------------------- fused Pallas kernel -----------------------------

def _layernorm(x, g, b):
    mean = jnp.mean(x, axis=-1, keepdims=True)
    var = jnp.mean((x - mean) ** 2, axis=-1, keepdims=True)   # biased var (PyTorch LN)
    return (x - mean) * jax.lax.rsqrt(var + LN_EPS) * g + b


def _encoder_stack_kernel(x_ref, bias_ref,
                          wqkv_ref, wfc_ref, bfc_ref,
                          ln1g_ref, ln1b_ref,
                          w1_ref, b1_ref, w2_ref, b2_ref,
                          ln2g_ref, ln2b_ref,
                          o_ref, *, n, l):
    """Whole encoder stack, one invocation.

    x:    (n*l, EMB)      lane-dense flattened activations
    bias: (n*l, n*l)      additive score bias (0 keep / -1e20 pad / -2e20 cross-batch)
    wqkv: (LAYERS, EMB, 128)  [q|k|v] block-diag per-head weights, q pre-scaled by 1/sqrt(EMB)
    """
    del n, l
    xf = x_ref[...]                       # (NL, EMB)
    bias = bias_ref[...]                  # (NL, NL), resident across layers & heads

    for layer in range(LAYERS):           # static unroll over layers
        # ---- fused Q/K/V projection: one MXU dot, 128-lane result ----
        qkv = jnp.dot(xf, wqkv_ref[layer],
                      preferred_element_type=jnp.float32)        # (NL, 128)

        wfc = wfc_ref[layer]              # (EMB, EMB) = fullyConnected W^T, [in,out]
        acc = None
        for h in range(HEADS):            # static unroll over heads, all 2-D dots
            s = h * DH
            qh = qkv[:, s:s + DH]                     # (NL, DH), already 1/sqrt(EMB)-scaled
            kh = qkv[:, EMB + s:EMB + s + DH]         # (NL, DH)
            vh = qkv[:, 2 * EMB + s:2 * EMB + s + DH] # (NL, DH)

            # scores for ALL (query,key) row pairs; cross-batch pairs killed by bias
            e = jnp.einsum('qd,kd->qk', qh, kh,
                           preferred_element_type=jnp.float32)   # (NL, NL)
            e = e + bias

            # softmax over keys (EUP approx reciprocal instead of f32 divide)
            m = jnp.max(e, axis=-1, keepdims=True)
            p = jnp.exp(e - m)
            a = p * pl.reciprocal(jnp.sum(p, axis=-1, keepdims=True), approx=True)

            ctx = jnp.dot(a, vh, preferred_element_type=jnp.float32)   # (NL, DH)
            # head-concat folded into the fullyConnected matmul:
            # concat(o_h) @ Wfc^T == sum_h o_h @ Wfc^T[h*DH:(h+1)*DH, :]
            contrib = jnp.dot(ctx, wfc[s:s + DH, :],
                              preferred_element_type=jnp.float32)      # (NL, EMB)
            acc = contrib if acc is None else acc + contrib
        attn = acc + bfc_ref[layer]                                     # (NL, EMB)

        # ---- residual + norm1 (dropout p=0 -> identity) ----
        h1 = _layernorm(attn + xf, ln1g_ref[layer], ln1b_ref[layer])

        # ---- feed-forward (Linear -> ReLU -> Linear), weights pre-transposed ----
        f = jnp.dot(h1, w1_ref[layer],
                    preferred_element_type=jnp.float32) + b1_ref[layer]
        f = jnp.maximum(f, 0.0)
        f = jnp.dot(f, w2_ref[layer],
                    preferred_element_type=jnp.float32) + b2_ref[layer]

        # ---- residual + norm2 ----
        xf = _layernorm(f + h1, ln2g_ref[layer], ln2b_ref[layer])

    o_ref[...] = xf


# ----------------------------- glue JAX wrapper -----------------------------

def _prepare_stacks(params):
    """Pre-transpose / block-diagonalize / fuse / stack per-layer weights once (glue)."""
    layers = params["layers"]
    eye = jnp.eye(HEADS, dtype=jnp.float32)
    blockdiag = lambda w: jnp.kron(eye, w.T)   # per-head (DH,DH) [out,in] -> (EMB,EMB) [in,out]

    def fused_qkv(lp):
        w = jnp.concatenate([blockdiag(lp["wq"]) * INV_SQRT_EMB,   # fold 1/sqrt(EMB) into Q
                             blockdiag(lp["wk"]),
                             blockdiag(lp["wv"])], axis=1)          # (EMB, 3*EMB)
        return jnp.pad(w, ((0, 0), (0, QKV_LANES - 3 * EMB)))       # (EMB, 128) lane-dense

    return dict(
        wqkv=jnp.stack([fused_qkv(lp) for lp in layers]),           # (LAYERS, EMB, 128)
        wfc=jnp.stack([lp["wfc"].T for lp in layers]),
        bfc=jnp.stack([lp["bfc"].reshape(1, EMB) for lp in layers]),
        ln1g=jnp.stack([lp["ln1_g"].reshape(1, EMB) for lp in layers]),
        ln1b=jnp.stack([lp["ln1_b"].reshape(1, EMB) for lp in layers]),
        w1=jnp.stack([lp["w1"].T for lp in layers]),                # (EMB, FF)
        b1=jnp.stack([lp["b1"].reshape(1, FF) for lp in layers]),
        w2=jnp.stack([lp["w2"].T for lp in layers]),                # (FF, EMB)
        b2=jnp.stack([lp["b2"].reshape(1, EMB) for lp in layers]),
        ln2g=jnp.stack([lp["ln2_g"].reshape(1, EMB) for lp in layers]),
        ln2b=jnp.stack([lp["ln2_b"].reshape(1, EMB) for lp in layers]),
    )


def encoder_forward(params, tokens, key_keep_mask):
    """Encoder.forward: tokens (N, L) int32, key_keep_mask (N, L) bool."""
    n, l = tokens.shape
    nl = n * l
    # embedding gather + positional embedding stay in glue JAX
    # TODO(synk): embedding lookup (gather) left in XLA; no clean tiny-Pallas win.
    x = params["word_emb"][tokens] + params["pos_emb"][jnp.arange(l)][None, :, :]
    xf = x.reshape(nl, EMB).astype(jnp.float32)          # lane-dense flattened activations

    # ONE additive (NL, NL) score bias: 0 keep / -1e20 padded key / -2e20 cross-batch
    batch_ids = jnp.repeat(jnp.arange(n), l)             # (NL,)
    keep = key_keep_mask.reshape(nl)                     # (NL,)
    same_batch = batch_ids[:, None] == batch_ids[None, :]
    bias = jnp.where(same_batch,
                     jnp.where(keep[None, :], 0.0, NEG_INF),
                     CROSS_NEG).astype(jnp.float32)      # (NL, NL)

    st = _prepare_stacks(params)
    out = pl.pallas_call(
        functools.partial(_encoder_stack_kernel, n=n, l=l),
        out_shape=jax.ShapeDtypeStruct((nl, EMB), jnp.float32),
        # Gridless on purpose at this size; a ("parallel",) batch grid would only
        # pay off on v7x once per-core work exceeds the ~0.35us/step overhead.
        compiler_params=pltpu.CompilerParams(),
    )(xf, bias,
      st["wqkv"], st["wfc"], st["bfc"],
      st["ln1g"], st["ln1b"], st["w1"], st["b1"], st["w2"], st["b2"],
      st["ln2g"], st["ln2b"])
    return out.reshape(n, l, EMB)


# ----------------------------- pure-JAX reference (correctness check) -----------------------------

def _ln_ref(x, g, b):
    mean = jnp.mean(x, axis=-1, keepdims=True)
    var = jnp.mean((x - mean) ** 2, axis=-1, keepdims=True)
    return (x - mean) * jax.lax.rsqrt(var + LN_EPS) * g + b


def encoder_reference(params, tokens, key_keep_mask):
    n, l = tokens.shape
    x = params["word_emb"][tokens] + params["pos_emb"][jnp.arange(l)][None, :, :]
    mask = key_keep_mask[:, None, None, :]                    # (N,1,1,L), torch-style
    for lp in params["layers"]:
        xh = x.reshape(n, l, HEADS, DH)
        v = xh @ lp["wv"].T
        k = xh @ lp["wk"].T
        q = xh @ lp["wq"].T
        energy = jnp.einsum('nqhd,nkhd->nhqk', q, k)
        energy = jnp.where(mask, energy, NEG_INF)             # masked_fill(mask==0)
        att = jax.nn.softmax(energy / (EMB ** 0.5), axis=3)
        out = jnp.einsum('nhqk,nkhd->nqhd', att, v).reshape(n, l, EMB)
        out = out @ lp["wfc"].T + lp["bfc"]
        h1 = _ln_ref(out + x, lp["ln1_g"], lp["ln1_b"])
        f = jnp.maximum(h1 @ lp["w1"].T + lp["b1"], 0.0)
        f = f @ lp["w2"].T + lp["b2"]
        x = _ln_ref(f + h1, lp["ln2_g"], lp["ln2_b"])
    return x


# ----------------------------- parameter init -----------------------------

def init_encoder(key):
    ks = jax.random.split(key, 2 + LAYERS)

    def init_layer(k):
        kk = jax.random.split(k, 9)
        return dict(
            wq=jax.random.normal(kk[0], (DH, DH), jnp.float32) * 0.1,
            wk=jax.random.normal(kk[1], (DH, DH), jnp.float32) * 0.1,
            wv=jax.random.normal(kk[2], (DH, DH), jnp.float32) * 0.1,
            wfc=jax.random.normal(kk[3], (EMB, EMB), jnp.float32) * 0.1,
            bfc=jax.random.normal(kk[4], (EMB,), jnp.float32) * 0.1,
            ln1_g=jnp.ones((EMB,), jnp.float32),
            ln1_b=jnp.zeros((EMB,), jnp.float32),
            ln2_g=jnp.ones((EMB,), jnp.float32),
            ln2_b=jnp.zeros((EMB,), jnp.float32),
            w1=jax.random.normal(kk[5], (FF, EMB), jnp.float32) * 0.1,
            b1=jax.random.normal(kk[6], (FF,), jnp.float32) * 0.1,
            w2=jax.random.normal(kk[7], (EMB, FF), jnp.float32) * 0.1,
            b2=jax.random.normal(kk[8], (EMB,), jnp.float32) * 0.1,
        )

    return dict(
        word_emb=jax.random.normal(ks[0], (SRC_VOCAB, EMB), jnp.float32) * 0.1,
        pos_emb=jax.random.normal(ks[1], (MAX_LEN, EMB), jnp.float32) * 0.1,
        layers=[init_layer(ks[2 + i]) for i in range(LAYERS)],
    )


# ----------------------------------- main -----------------------------------

if __name__ == "__main__":
    root = jax.random.PRNGKey(0)
    kp, kt = jax.random.split(root)
    params = init_encoder(kp)

    N, L = 2, 8
    tokens = jax.random.randint(kt, (N, L), 1, SRC_VOCAB, dtype=jnp.int32)
    tokens = tokens.at[0, 6:].set(PAD_IDX)      # padding to exercise the source mask
    key_keep = tokens != PAD_IDX                # (N, L) bool key-padding keep-mask

    fwd = jax.jit(encoder_forward)
    out = jax.block_until_ready(fwd(params, tokens, key_keep))

    assert out.shape == (N, L, EMB)
    assert bool(jnp.all(jnp.isfinite(out)))

    ref = encoder_reference(params, tokens, key_keep)
    assert bool(jnp.allclose(out, ref, atol=2e-3, rtol=2e-3)), "mismatch vs pure-JAX reference"

    print("KERNEL_OK")
</pallas_src>

<mosaic_0001>
module attributes {stable_mosaic.version = 11 : i64} {
  func.func @_encoder_stack_kernel(%arg0: memref<16x32xf32, #tpu.memory_space<vmem>>, %arg1: memref<16x16xf32, #tpu.memory_space<vmem>>, %arg2: memref<2x32x128xf32, #tpu.memory_space<vmem>>, %arg3: memref<2x32x32xf32, #tpu.memory_space<vmem>>, %arg4: memref<2x1x32xf32, #tpu.memory_space<vmem>>, %arg5: memref<2x1x32xf32, #tpu.memory_space<vmem>>, %arg6: memref<2x1x32xf32, #tpu.memory_space<vmem>>, %arg7: memref<2x32x128xf32, #tpu.memory_space<vmem>>, %arg8: memref<2x1x128xf32, #tpu.memory_space<vmem>>, %arg9: memref<2x128x32xf32, #tpu.memory_space<vmem>>, %arg10: memref<2x1x32xf32, #tpu.memory_space<vmem>>, %arg11: memref<2x1x32xf32, #tpu.memory_space<vmem>>, %arg12: memref<2x1x32xf32, #tpu.memory_space<vmem>>, %arg13: memref<16x32xf32, #tpu.memory_space<vmem>>) attributes {dimension_semantics = [], scalar_prefetch = 0 : i64, scratch_operands = 0 : i64, tpu.core_type = #tpu.core_type<tc>} {
    %c0 = arith.constant 0 : index
    %c0_0 = arith.constant 0 : index
    %0 = vector.load %arg0[%c0, %c0_0] : memref<16x32xf32, #tpu.memory_space<vmem>>, vector<16x32xf32>
    %c0_1 = arith.constant 0 : index
    %c0_2 = arith.constant 0 : index
    %1 = vector.load %arg1[%c0_1, %c0_2] : memref<16x16xf32, #tpu.memory_space<vmem>>, vector<16x16xf32>
    %c0_3 = arith.constant 0 : index
    %c0_4 = arith.constant 0 : index
    %c0_5 = arith.constant 0 : index
    %2 = vector.load %arg2[%c0_3, %c0_4, %c0_5] : memref<2x32x128xf32, #tpu.memory_space<vmem>>, vector<1x32x128xf32>
    %3 = vector.shape_cast %2 : vector<1x32x128xf32> to vector<32x128xf32>
    %cst = arith.constant dense<0.000000e+00> : vector<16x128xf32>
    %4 = tpu.matmul %0, %3, %cst {dimension_numbers = #tpu.dot_dimension_numbers<[1], [0], [0], [1], [0, 0, 1, 1], [], []>} : vector<16x32xf32>, vector<32x128xf32>, vector<16x128xf32> -> vector<16x128xf32>
    %c0_6 = arith.constant 0 : index
    %c0_7 = arith.constant 0 : index
    %c0_8 = arith.constant 0 : index
    %5 = vector.load %arg3[%c0_6, %c0_7, %c0_8] : memref<2x32x32xf32, #tpu.memory_space<vmem>>, vector<1x32x32xf32>
    %6 = vector.shape_cast %5 : vector<1x32x32xf32> to vector<32x32xf32>
    %7 = vector.extract_strided_slice %4 {offsets = [0, 0], sizes = [16, 8], strides = [1, 1]} : vector<16x128xf32> to vector<16x8xf32>
    %8 = vector.extract_strided_slice %4 {offsets = [0, 32], sizes = [16, 8], strides = [1, 1]} : vector<16x128xf32> to vector<16x8xf32>
    %9 = vector.extract_strided_slice %4 {offsets = [0, 64], sizes = [16, 8], strides = [1, 1]} : vector<16x128xf32> to vector<16x8xf32>
    "tpu.trace_start"() <{level = 10 : i32, message = "qd,kd->qk"}> : () -> ()
    %cst_9 = arith.constant dense<0.000000e+00> : vector<16x16xf32>
    %10 = tpu.matmul %7, %8, %cst_9 {dimension_numbers = #tpu.dot_dimension_numbers<[1], [1], [0], [0], [0, 0, 1, 0], [], []>} : vector<16x8xf32>, vector<16x8xf32>, vector<16x16xf32> -> vector<16x16xf32>
    "tpu.trace_stop"() : () -> ()
    %11 = arith.addf %10, %1 : vector<16x16xf32>
    %cst_10 = arith.constant dense<0xFF800000> : vector<16xf32>
    %12 = vector.multi_reduction <maximumf>, %11, %cst_10 [1] : vector<16x16xf32> to vector<16xf32>
    %13 = vector.shape_cast %12 : vector<16xf32> to vector<16x1xf32>
    %14 = vector.broadcast %13 : vector<16x1xf32> to vector<16x16xf32>
    %15 = arith.subf %11, %14 : vector<16x16xf32>
    %16 = math.exp %15 : vector<16x16xf32>
    %cst_11 = arith.constant dense<0.000000e+00> : vector<16xf32>
    %17 = vector.multi_reduction <add>, %16, %cst_11 [1] : vector<16x16xf32> to vector<16xf32>
    %18 = vector.shape_cast %17 : vector<16xf32> to vector<16x1xf32>
    %19 = tpu.reciprocal %18 {approx = true} : vector<16x1xf32> -> vector<16x1xf32>
    %20 = vector.broadcast %19 : vector<16x1xf32> to vector<16x16xf32>
    %21 = arith.mulf %16, %20 : vector<16x16xf32>
    %cst_12 = arith.constant dense<0.000000e+00> : vector<16x8xf32>
    %22 = tpu.matmul %21, %9, %cst_12 {dimension_numbers = #tpu.dot_dimension_numbers<[1], [0], [0], [1], [0, 0, 1, 1], [], []>} : vector<16x16xf32>, vector<16x8xf32>, vector<16x8xf32> -> vector<16x8xf32>
    %23 = vector.extract_strided_slice %6 {offsets = [0, 0], sizes = [8, 32], strides = [1, 1]} : vector<32x32xf32> to vector<8x32xf32>
    %cst_13 = arith.constant dense<0.000000e+00> : vector<16x32xf32>
    %24 = tpu.matmul %22, %23, %cst_13 {dimension_numbers = #tpu.dot_dimension_numbers<[1], [0], [0], [1], [0, 0, 1, 1], [], []>} : vector<16x8xf32>, vector<8x32xf32>, vector<16x32xf32> -> vector<16x32xf32>
    %25 = vector.extract_strided_slice %4 {offsets = [0, 8], sizes = [16, 8], strides = [1, 1]} : vector<16x128xf32> to vector<16x8xf32>
    %26 = vector.extract_strided_slice %4 {offsets = [0, 40], sizes = [16, 8], strides = [1, 1]} : vector<16x128xf32> to vector<16x8xf32>
    %27 = vector.extract_strided_slice %4 {offsets = [0, 72], sizes = [16, 8], strides = [1, 1]} : vector<16x128xf32> to vector<16x8xf32>
    "tpu.trace_start"() <{level = 10 : i32, message = "qd,kd->qk"}> : () -> ()
    %cst_14 = arith.constant dense<0.000000e+00> : vector<16x16xf32>
    %28 = tpu.matmul %25, %26, %cst_14 {dimension_numbers = #tpu.dot_dimension_numbers<[1], [1], [0], [0], [0, 0, 1, 0], [], []>} : vector<16x8xf32>, vector<16x8xf32>, vector<16x16xf32> -> vector<16x16xf32>
    "tpu.trace_stop"() : () -> ()
    %29 = arith.addf %28, %1 : vector<16x16xf32>
    %cst_15 = arith.constant dense<0xFF800000> : vector<16xf32>
    %30 = vector.multi_reduction <maximumf>, %29, %cst_15 [1] : vector<16x16xf32> to vector<16xf32>
    %31 = vector.shape_cast %30 : vector<16xf32> to vector<16x1xf32>
    %32 = vector.broadcast %31 : vector<16x1xf32> to vector<16x16xf32>
    %33 = arith.subf %29, %32 : vector<16x16xf32>
    %34 = math.exp %33 : vector<16x16xf32>
    %cst_16 = arith.constant dense<0.000000e+00> : vector<16xf32>
    %35 = vector.multi_reduction <add>, %34, %cst_16 [1] : vector<16x16xf32> to vector<16xf32>
    %36 = vector.shape_cast %35 : vector<16xf32> to vector<16x1xf32>
    %37 = tpu.reciprocal %36 {approx = true} : vector<16x1xf32> -> vector<16x1xf32>
    %38 = vector.broadcast %37 : vector<16x1xf32> to vector<16x16xf32>
    %39 = arith.mulf %34, %38 : vector<16x16xf32>
    %cst_17 = arith.constant dense<0.000000e+00> : vector<16x8xf32>
    %40 = tpu.matmul %39, %27, %cst_17 {dimension_numbers = #tpu.dot_dimension_numbers<[1], [0], [0], [1], [0, 0, 1, 1], [], []>} : vector<16x16xf32>, vector<16x8xf32>, vector<16x8xf32> -> vector<16x8xf32>
    %41 = vector.extract_strided_slice %6 {offsets = [8, 0], sizes = [8, 32], strides = [1, 1]} : vector<32x32xf32> to vector<8x32xf32>
    %cst_18 = arith.constant dense<0.000000e+00> : vector<16x32xf32>
    %42 = tpu.matmul %40, %41, %cst_18 {dimension_numbers = #tpu.dot_dimension_numbers<[1], [0], [0], [1], [0, 0, 1, 1], [], []>} : vector<16x8xf32>, vector<8x32xf32>, vector<16x32xf32> -> vector<16x32xf32>
    %43 = arith.addf %24, %42 : vector<16x32xf32>
    %44 = vector.extract_strided_slice %4 {offsets = [0, 16], sizes = [16, 8], strides = [1, 1]} : vector<16x128xf32> to vector<16x8xf32>
    %45 = vector.extract_strided_slice %4 {offsets = [0, 48], sizes = [16, 8], strides = [1, 1]} : vector<16x128xf32> to vector<16x8xf32>
    %46 = vector.extract_strided_slice %4 {offsets = [0, 80], sizes = [16, 8], strides = [1, 1]} : vector<16x128xf32> to vector<16x8xf32>
    "tpu.trace_start"() <{level = 10 : i32, message = "qd,kd->qk"}> : () -> ()
    %cst_19 = arith.constant dense<0.000000e+00> : vector<16x16xf32>
    %47 = tpu.matmul %44, %45, %cst_19 {dimension_numbers = #tpu.dot_dimension_numbers<[1], [1], [0], [0], [0, 0, 1, 0], [], []>} : vector<16x8xf32>, vector<16x8xf32>, vector<16x16xf32> -> vector<16x16xf32>
    "tpu.trace_stop"() : () -> ()
    %48 = arith.addf %47, %1 : vector<16x16xf32>
    %cst_20 = arith.constant dense<0xFF800000> : vector<16xf32>
    %49 = vector.multi_reduction <maximumf>, %48, %cst_20 [1] : vector<16x16xf32> to vector<16xf32>
    %50 = vector.shape_cast %49 : vector<16xf32> to vector<16x1xf32>
    %51 = vector.broadcast %50 : vector<16x1xf32> to vector<16x16xf32>
    %52 = arith.subf %48, %51 : vector<16x16xf32>
    %53 = math.exp %52 : vector<16x16xf32>
    %cst_21 = arith.constant dense<0.000000e+00> : vector<16xf32>
    %54 = vector.multi_reduction <add>, %53, %cst_21 [1] : vector<16x16xf32> to vector<16xf32>
    %55 = vector.shape_cast %54 : vector<16xf32> to vector<16x1xf32>
    %56 = tpu.reciprocal %55 {approx = true} : vector<16x1xf32> -> vector<16x1xf32>
    %57 = vector.broadcast %56 : vector<16x1xf32> to vector<16x16xf32>
    %58 = arith.mulf %53, %57 : vector<16x16xf32>
    %cst_22 = arith.constant dense<0.000000e+00> : vector<16x8xf32>
    %59 = tpu.matmul %58, %46, %cst_22 {dimension_numbers = #tpu.dot_dimension_numbers<[1], [0], [0], [1], [0, 0, 1, 1], [], []>} : vector<16x16xf32>, vector<16x8xf32>, vector<16x8xf32> -> vector<16x8xf32>
    %60 = vector.extract_strided_slice %6 {offsets = [16, 0], sizes = [8, 32], strides = [1, 1]} : vector<32x32xf32> to vector<8x32xf32>
    %cst_23 = arith.constant dense<0.000000e+00> : vector<16x32xf32>
    %61 = tpu.matmul %59, %60, %cst_23 {dimension_numbers = #tpu.dot_dimension_numbers<[1], [0], [0], [1], [0, 0, 1, 1], [], []>} : vector<16x8xf32>, vector<8x32xf32>, vector<16x32xf32> -> vector<16x32xf32>
    %62 = arith.addf %43, %61 : vector<16x32xf32>
    %63 = vector.extract_strided_slice %4 {offsets = [0, 24], sizes = [16, 8], strides = [1, 1]} : vector<16x128xf32> to vector<16x8xf32>
    %64 = vector.extract_strided_slice %4 {offsets = [0, 56], sizes = [16, 8], strides = [1, 1]} : vector<16x128xf32> to vector<16x8xf32>
    %65 = vector.extract_strided_slice %4 {offsets = [0, 88], sizes = [16, 8], strides = [1, 1]} : vector<16x128xf32> to vector<16x8xf32>
    "tpu.trace_start"() <{level = 10 : i32, message = "qd,kd->qk"}> : () -> ()
    %cst_24 = arith.constant dense<0.000000e+00> : vector<16x16xf32>
    %66 = tpu.matmul %63, %64, %cst_24 {dimension_numbers = #tpu.dot_dimension_numbers<[1], [1], [0], [0], [0, 0, 1, 0], [], []>} : vector<16x8xf32>, vector<16x8xf32>, vector<16x16xf32> -> vector<16x16xf32>
    "tpu.trace_stop"() : () -> ()
    %67 = arith.addf %66, %1 : vector<16x16xf32>
    %cst_25 = arith.constant dense<0xFF800000> : vector<16xf32>
    %68 = vector.multi_reduction <maximumf>, %67, %cst_25 [1] : vector<16x16xf32> to vector<16xf32>
    %69 = vector.shape_cast %68 : vector<16xf32> to vector<16x1xf32>
    %70 = vector.broadcast %69 : vector<16x1xf32> to vector<16x16xf32>
    %71 = arith.subf %67, %70 : vector<16x16xf32>
    %72 = math.exp %71 : vector<16x16xf32>
    %cst_26 = arith.constant dense<0.000000e+00> : vector<16xf32>
    %73 = vector.multi_reduction <add>, %72, %cst_26 [1] : vector<16x16xf32> to vector<16xf32>
    %74 = vector.shape_cast %73 : vector<16xf32> to vector<16x1xf32>
    %75 = tpu.reciprocal %74 {approx = true} : vector<16x1xf32> -> vector<16x1xf32>
    %76 = vector.broadcast %75 : vector<16x1xf32> to vector<16x16xf32>
    %77 = arith.mulf %72, %76 : vector<16x16xf32>
    %cst_27 = arith.constant dense<0.000000e+00> : vector<16x8xf32>
    %78 = tpu.matmul %77, %65, %cst_27 {dimension_numbers = #tpu.dot_dimension_numbers<[1], [0], [0], [1], [0, 0, 1, 1], [], []>} : vector<16x16xf32>, vector<16x8xf32>, vector<16x8xf32> -> vector<16x8xf32>
    %79 = vector.extract_strided_slice %6 {offsets = [24, 0], sizes = [8, 32], strides = [1, 1]} : vector<32x32xf32> to vector<8x32xf32>
    %cst_28 = arith.constant dense<0.000000e+00> : vector<16x32xf32>
    %80 = tpu.matmul %78, %79, %cst_28 {dimension_numbers = #tpu.dot_dimension_numbers<[1], [0], [0], [1], [0, 0, 1, 1], [], []>} : vector<16x8xf32>, vector<8x32xf32>, vector<16x32xf32> -> vector<16x32xf32>
    %81 = arith.addf %62, %80 : vector<16x32xf32>
    %c0_29 = arith.constant 0 : index
    %c0_30 = arith.constant 0 : index
    %c0_31 = arith.constant 0 : index
    %82 = vector.load %arg4[%c0_29, %c0_30, %c0_31] : memref<2x1x32xf32, #tpu.memory_space<vmem>>, vector<1x1x32xf32>
    %83 = vector.shape_cast %82 : vector<1x1x32xf32> to vector<1x32xf32>
    %84 = vector.broadcast %83 : vector<1x32xf32> to vector<16x32xf32>
    %85 = arith.addf %81, %84 : vector<16x32xf32>
    %86 = arith.addf %85, %0 : vector<16x32xf32>
    %c0_32 = arith.constant 0 : index
    %c0_33 = arith.constant 0 : index
    %c0_34 = arith.constant 0 : index
    %87 = vector.load %arg5[%c0_32, %c0_33, %c0_34] : memref<2x1x32xf32, #tpu.memory_space<vmem>>, vector<1x1x32xf32>
    %88 = vector.shape_cast %87 : vector<1x1x32xf32> to vector<1x32xf32>
    %c0_35 = arith.constant 0 : index
    %c0_36 = arith.constant 0 : index
    %c0_37 = arith.constant 0 : index
    %89 = vector.load %arg6[%c0_35, %c0_36, %c0_37] : memref<2x1x32xf32, #tpu.memory_space<vmem>>, vector<1x1x32xf32>
    %90 = vector.shape_cast %89 : vector<1x1x32xf32> to vector<1x32xf32>
    %cst_38 = arith.constant dense<0.000000e+00> : vector<16xf32>
    %91 = vector.multi_reduction <add>, %86, %cst_38 [1] : vector<16x32xf32> to vector<16xf32>
    %92 = vector.shape_cast %91 : vector<16xf32> to vector<16x1xf32>
    %cst_39 = arith.constant 3.200000e+01 : f32
    %93 = vector.broadcast %cst_39 : f32 to vector<16x1xf32>
    %94 = arith.divf %92, %93 : vector<16x1xf32>
    %95 = vector.broadcast %94 : vector<16x1xf32> to vector<16x32xf32>
    %96 = arith.subf %86, %95 : vector<16x32xf32>
    %97 = arith.mulf %96, %96 : vector<16x32xf32>
    %cst_40 = arith.constant dense<0.000000e+00> : vector<16xf32>
    %98 = vector.multi_reduction <add>, %97, %cst_40 [1] : vector<16x32xf32> to vector<16xf32>
    %99 = vector.shape_cast %98 : vector<16xf32> to vector<16x1xf32>
    %cst_41 = arith.constant 3.200000e+01 : f32
    %100 = vector.broadcast %cst_41 : f32 to vector<16x1xf32>
    %101 = arith.divf %99, %100 : vector<16x1xf32>
    %102 = vector.broadcast %94 : vector<16x1xf32> to vector<16x32xf32>
    %103 = arith.subf %86, %102 : vector<16x32xf32>
    %cst_42 = arith.constant 9.99999974E-6 : f32
    %104 = vector.broadcast %cst_42 : f32 to vector<16x1xf32>
    %105 = arith.addf %101, %104 : vector<16x1xf32>
    %106 = math.rsqrt %105 : vector<16x1xf32>
    %107 = vector.broadcast %106 : vector<16x1xf32> to vector<16x32xf32>
    %108 = arith.mulf %103, %107 : vector<16x32xf32>
    %109 = vector.broadcast %88 : vector<1x32xf32> to vector<16x32xf32>
    %110 = arith.mulf %108, %109 : vector<16x32xf32>
    %111 = vector.broadcast %90 : vector<1x32xf32> to vector<16x32xf32>
    %112 = arith.addf %110, %111 : vector<16x32xf32>
    %c0_43 = arith.constant 0 : index
    %c0_44 = arith.constant 0 : index
    %c0_45 = arith.constant 0 : index
    %113 = vector.load %arg7[%c0_43, %c0_44, %c0_45] : memref<2x32x128xf32, #tpu.memory_space<vmem>>, vector<1x32x128xf32>
    %114 = vector.shape_cast %113 : vector<1x32x128xf32> to vector<32x128xf32>
    %cst_46 = arith.constant dense<0.000000e+00> : vector<16x128xf32>
    %115 = tpu.matmul %112, %114, %cst_46 {dimension_numbers = #tpu.dot_dimension_numbers<[1], [0], [0], [1], [0, 0, 1, 1], [], []>} : vector<16x32xf32>, vector<32x128xf32>, vector<16x128xf32> -> vector<16x128xf32>
    %c0_47 = arith.constant 0 : index
    %c0_48 = arith.constant 0 : index
    %c0_49 = arith.constant 0 : index
    %116 = vector.load %arg8[%c0_47, %c0_48, %c0_49] : memref<2x1x128xf32, #tpu.memory_space<vmem>>, vector<1x1x128xf32>
    %117 = vector.shape_cast %116 : vector<1x1x128xf32> to vector<1x128xf32>
    %118 = vector.broadcast %117 : vector<1x128xf32> to vector<16x128xf32>
    %119 = arith.addf %115, %118 : vector<16x128xf32>
    %cst_50 = arith.constant 0.000000e+00 : f32
    %120 = vector.broadcast %cst_50 : f32 to vector<16x128xf32>
    %121 = arith.maximumf %119, %120 : vector<16x128xf32>
    %c0_51 = arith.constant 0 : index
    %c0_52 = arith.constant 0 : index
    %c0_53 = arith.constant 0 : index
    %122 = vector.load %arg9[%c0_51, %c0_52, %c0_53] : memref<2x128x32xf32, #tpu.memory_space<vmem>>, vector<1x128x32xf32>
    %123 = vector.shape_cast %122 : vector<1x128x32xf32> to vector<128x32xf32>
    %cst_54 = arith.constant dense<0.000000e+00> : vector<16x32xf32>
    %124 = tpu.matmul %121, %123, %cst_54 {dimension_numbers = #tpu.dot_dimension_numbers<[1], [0], [0], [1], [0, 0, 1, 1], [], []>} : vector<16x128xf32>, vector<128x32xf32>, vector<16x32xf32> -> vector<16x32xf32>
    %c0_55 = arith.constant 0 : index
    %c0_56 = arith.constant 0 : index
    %c0_57 = arith.constant 0 : index
    %125 = vector.load %arg10[%c0_55, %c0_56, %c0_57] : memref<2x1x32xf32, #tpu.memory_space<vmem>>, vector<1x1x32xf32>
    %126 = vector.shape_cast %125 : vector<1x1x32xf32> to vector<1x32xf32>
    %127 = vector.broadcast %126 : vector<1x32xf32> to vector<16x32xf32>
    %128 = arith.addf %124, %127 : vector<16x32xf32>
    %129 = arith.addf %128, %112 : vector<16x32xf32>
    %c0_58 = arith.constant 0 : index
    %c0_59 = arith.constant 0 : index
    %c0_60 = arith.constant 0 : index
    %130 = vector.load %arg11[%c0_58, %c0_59, %c0_60] : memref<2x1x32xf32, #tpu.memory_space<vmem>>, vector<1x1x32xf32>
    %131 = vector.shape_cast %130 : vector<1x1x32xf32> to vector<1x32xf32>
    %c0_61 = arith.constant 0 : index
    %c0_62 = arith.constant 0 : index
    %c0_63 = arith.constant 0 : index
    %132 = vector.load %arg12[%c0_61, %c0_62, %c0_63] : memref<2x1x32xf32, #tpu.memory_space<vmem>>, vector<1x1x32xf32>
    %133 = vector.shape_cast %132 : vector<1x1x32xf32> to vector<1x32xf32>
    %cst_64 = arith.constant dense<0.000000e+00> : vector<16xf32>
    %134 = vector.multi_reduction <add>, %129, %cst_64 [1] : vector<16x32xf32> to vector<16xf32>
    %135 = vector.shape_cast %134 : vector<16xf32> to vector<16x1xf32>
    %cst_65 = arith.constant 3.200000e+01 : f32
    %136 = vector.broadcast %cst_65 : f32 to vector<16x1xf32>
    %137 = arith.divf %135, %136 : vector<16x1xf32>
    %138 = vector.broadcast %137 : vector<16x1xf32> to vector<16x32xf32>
    %139 = arith.subf %129, %138 : vector<16x32xf32>
    %140 = arith.mulf %139, %139 : vector<16x32xf32>
    %cst_66 = arith.constant dense<0.000000e+00> : vector<16xf32>
    %141 = vector.multi_reduction <add>, %140, %cst_66 [1] : vector<16x32xf32> to vector<16xf32>
    %142 = vector.shape_cast %141 : vector<16xf32> to vector<16x1xf32>
    %cst_67 = arith.constant 3.200000e+01 : f32
    %143 = vector.broadcast %cst_67 : f32 to vector<16x1xf32>
    %144 = arith.divf %142, %143 : vector<16x1xf32>
    %145 = vector.broadcast %137 : vector<16x1xf32> to vector<16x32xf32>
    %146 = arith.subf %129, %145 : vector<16x32xf32>
    %cst_68 = arith.constant 9.99999974E-6 : f32
    %147 = vector.broadcast %cst_68 : f32 to vector<16x1xf32>
    %148 = arith.addf %144, %147 : vector<16x1xf32>
    %149 = math.rsqrt %148 : vector<16x1xf32>
    %150 = vector.broadcast %149 : vector<16x1xf32> to vector<16x32xf32>
    %151 = arith.mulf %146, %150 : vector<16x32xf32>
    %152 = vector.broadcast %131 : vector<1x32xf32> to vector<16x32xf32>
    %153 = arith.mulf %151, %152 : vector<16x32xf32>
    %154 = vector.broadcast %133 : vector<1x32xf32> to vector<16x32xf32>
    %155 = arith.addf %153, %154 : vector<16x32xf32>
    %c1 = arith.constant 1 : index
    %c0_69 = arith.constant 0 : index
    %c0_70 = arith.constant 0 : index
    %156 = vector.load %arg2[%c1, %c0_69, %c0_70] : memref<2x32x128xf32, #tpu.memory_space<vmem>>, vector<1x32x128xf32>
    %157 = vector.shape_cast %156 : vector<1x32x128xf32> to vector<32x128xf32>
    %cst_71 = arith.constant dense<0.000000e+00> : vector<16x128xf32>
    %158 = tpu.matmul %155, %157, %cst_71 {dimension_numbers = #tpu.dot_dimension_numbers<[1], [0], [0], [1], [0, 0, 1, 1], [], []>} : vector<16x32xf32>, vector<32x128xf32>, vector<16x128xf32> -> vector<16x128xf32>
    %c1_72 = arith.constant 1 : index
    %c0_73 = arith.constant 0 : index
    %c0_74 = arith.constant 0 : index
    %159 = vector.load %arg3[%c1_72, %c0_73, %c0_74] : memref<2x32x32xf32, #tpu.memory_space<vmem>>, vector<1x32x32xf32>
    %160 = vector.shape_cast %159 : vector<1x32x32xf32> to vector<32x32xf32>
    %161 = vector.extract_strided_slice %158 {offsets = [0, 0], sizes = [16, 8], strides = [1, 1]} : vector<16x128xf32> to vector<16x8xf32>
    %162 = vector.extract_strided_slice %158 {offsets = [0, 32], sizes = [16, 8], strides = [1, 1]} : vector<16x128xf32> to vector<16x8xf32>
    %163 = vector.extract_strided_slice %158 {offsets = [0, 64], sizes = [16, 8], strides = [1, 1]} : vector<16x128xf32> to vector<16x8xf32>
    "tpu.trace_start"() <{level = 10 : i32, message = "qd,kd->qk"}> : () -> ()
    %cst_75 = arith.constant dense<0.000000e+00> : vector<16x16xf32>
    %164 = tpu.matmul %161, %162, %cst_75 {dimension_numbers = #tpu.dot_dimension_numbers<[1], [1], [0], [0], [0, 0, 1, 0], [], []>} : vector<16x8xf32>, vector<16x8xf32>, vector<16x16xf32> -> vector<16x16xf32>
    "tpu.trace_stop"() : () -> ()
    %165 = arith.addf %164, %1 : vector<16x16xf32>
    %cst_76 = arith.constant dense<0xFF800000> : vector<16xf32>
    %166 = vector.multi_reduction <maximumf>, %165, %cst_76 [1] : vector<16x16xf32> to vector<16xf32>
    %167 = vector.shape_cast %166 : vector<16xf32> to vector<16x1xf32>
    %168 = vector.broadcast %167 : vector<16x1xf32> to vector<16x16xf32>
    %169 = arith.subf %165, %168 : vector<16x16xf32>
    %170 = math.exp %169 : vector<16x16xf32>
    %cst_77 = arith.constant dense<0.000000e+00> : vector<16xf32>
    %171 = vector.multi_reduction <add>, %170, %cst_77 [1] : vector<16x16xf32> to vector<16xf32>
    %172 = vector.shape_cast %171 : vector<16xf32> to vector<16x1xf32>
    %173 = tpu.reciprocal %172 {approx = true} : vector<16x1xf32> -> vector<16x1xf32>
    %174 = vector.broadcast %173 : vector<16x1xf32> to vector<16x16xf32>
    %175 = arith.mulf %170, %174 : vector<16x16xf32>
    %cst_78 = arith.constant dense<0.000000e+00> : vector<16x8xf32>
    %176 = tpu.matmul %175, %163, %cst_78 {dimension_numbers = #tpu.dot_dimension_numbers<[1], [0], [0], [1], [0, 0, 1, 1], [], []>} : vector<16x16xf32>, vector<16x8xf32>, vector<16x8xf32> -> vector<16x8xf32>
    %177 = vector.extract_strided_slice %160 {offsets = [0, 0], sizes = [8, 32], strides = [1, 1]} : vector<32x32xf32> to vector<8x32xf32>
    %cst_79 = arith.constant dense<0.000000e+00> : vector<16x32xf32>
    %178 = tpu.matmul %176, %177, %cst_79 {dimension_numbers = #tpu.dot_dimension_numbers<[1], [0], [0], [1], [0, 0, 1, 1], [], []>} : vector<16x8xf32>, vector<8x32xf32>, vector<16x32xf32> -> vector<16x32xf32>
    %179 = vector.extract_strided_slice %158 {offsets = [0, 8], sizes = [16, 8], strides = [1, 1]} : vector<16x128xf32> to vector<16x8xf32>
    %180 = vector.extract_strided_slice %158 {offsets = [0, 40], sizes = [16, 8], strides = [1, 1]} : vector<16x128xf32> to vector<16x8xf32>
    %181 = vector.extract_strided_slice %158 {offsets = [0, 72], sizes = [16, 8], strides = [1, 1]} : vector<16x128xf32> to vector<16x8xf32>
    "tpu.trace_start"() <{level = 10 : i32, message = "qd,kd->qk"}> : () -> ()
    %cst_80 = arith.constant dense<0.000000e+00> : vector<16x16xf32>
    %182 = tpu.matmul %179, %180, %cst_80 {dimension_numbers = #tpu.dot_dimension_numbers<[1], [1], [0], [0], [0, 0, 1, 0], [], []>} : vector<16x8xf32>, vector<16x8xf32>, vector<16x16xf32> -> vector<16x16xf32>
    "tpu.trace_stop"() : () -> ()
    %183 = arith.addf %182, %1 : vector<16x16xf32>
    %cst_81 = arith.constant dense<0xFF800000> : vector<16xf32>
    %184 = vector.multi_reduction <maximumf>, %183, %cst_81 [1] : vector<16x16xf32> to vector<16xf32>
    %185 = vector.shape_cast %184 : vector<16xf32> to vector<16x1xf32>
    %186 = vector.broadcast %185 : vector<16x1xf32> to vector<16x16xf32>
    %187 = arith.subf %183, %186 : vector<16x16xf32>
    %188 = math.exp %187 : vector<16x16xf32>
    %cst_82 = arith.constant dense<0.000000e+00> : vector<16xf32>
    %189 = vector.multi_reduction <add>, %188, %cst_82 [1] : vector<16x16xf32> to vector<16xf32>
    %190 = vector.shape_cast %189 : vector<16xf32> to vector<16x1xf32>
    %191 = tpu.reciprocal %190 {approx = true} : vector<16x1xf32> -> vector<16x1xf32>
    %192 = vector.broadcast %191 : vector<16x1xf32> to vector<16x16xf32>
    %193 = arith.mulf %188, %192 : vector<16x16xf32>
    %cst_83 = arith.constant dense<0.000000e+00> : vector<16x8xf32>
    %194 = tpu.matmul %193, %181, %cst_83 {dimension_numbers = #tpu.dot_dimension_numbers<[1], [0], [0], [1], [0, 0, 1, 1], [], []>} : vector<16x16xf32>, vector<16x8xf32>, vector<16x8xf32> -> vector<16x8xf32>
    %195 = vector.extract_strided_slice %160 {offsets = [8, 0], sizes = [8, 32], strides = [1, 1]} : vector<32x32xf32> to vector<8x32xf32>
    %cst_84 = arith.constant dense<0.000000e+00> : vector<16x32xf32>
    %196 = tpu.matmul %194, %195, %cst_84 {dimension_numbers = #tpu.dot_dimension_numbers<[1], [0], [0], [1], [0, 0, 1, 1], [], []>} : vector<16x8xf32>, vector<8x32xf32>, vector<16x32xf32> -> vector<16x32xf32>
    %197 = arith.addf %178, %196 : vector<16x32xf32>
    %198 = vector.extract_strided_slice %158 {offsets = [0, 16], sizes = [16, 8], strides = [1, 1]} : vector<16x128xf32> to vector<16x8xf32>
    %199 = vector.extract_strided_slice %158 {offsets = [0, 48], sizes = [16, 8], strides = [1, 1]} : vector<16x128xf32> to vector<16x8xf32>
    %200 = vector.extract_strided_slice %158 {offsets = [0, 80], sizes = [16, 8], strides = [1, 1]} : vector<16x128xf32> to vector<16x8xf32>
    "tpu.trace_start"() <{level = 10 : i32, message = "qd,kd->qk"}> : () -> ()
    %cst_85 = arith.constant dense<0.000000e+00> : vector<16x16xf32>
    %201 = tpu.matmul %198, %199, %cst_85 {dimension_numbers = #tpu.dot_dimension_numbers<[1], [1], [0], [0], [0, 0, 1, 0], [], []>} : vector<16x8xf32>, vector<16x8xf32>, vector<16x16xf32> -> vector<16x16xf32>
    "tpu.trace_stop"() : () -> ()
    %202 = arith.addf %201, %1 : vector<16x16xf32>
    %cst_86 = arith.constant dense<0xFF800000> : vector<16xf32>
    %203 = vector.multi_reduction <maximumf>, %202, %cst_86 [1] : vector<16x16xf32> to vector<16xf32>
    %204 = vector.shape_cast %203 : vector<16xf32> to vector<16x1xf32>
    %205 = vector.broadcast %204 : vector<16x1xf32> to vector<16x16xf32>
    %206 = arith.subf %202, %205 : vector<16x16xf32>
    %207 = math.exp %206 : vector<16x16xf32>
    %cst_87 = arith.constant dense<0.000000e+00> : vector<16xf32>
    %208 = vector.multi_reduction <add>, %207, %cst_87 [1] : vector<16x16xf32> to vector<16xf32>
    %209 = vector.shape_cast %208 : vector<16xf32> to vector<16x1xf32>
    %210 = tpu.reciprocal %209 {approx = true} : vector<16x1xf32> -> vector<16x1xf32>
    %211 = vector.broadcast %210 : vector<16x1xf32> to vector<16x16xf32>
    %212 = arith.mulf %207, %211 : vector<16x16xf32>
    %cst_88 = arith.constant dense<0.000000e+00> : vector<16x8xf32>
    %213 = tpu.matmul %212, %200, %cst_88 {dimension_numbers = #tpu.dot_dimension_numbers<[1], [0], [0], [1], [0, 0, 1, 1], [], []>} : vector<16x16xf32>, vector<16x8xf32>, vector<16x8xf32> -> vector<16x8xf32>
    %214 = vector.extract_strided_slice %160 {offsets = [16, 0], sizes = [8, 32], strides = [1, 1]} : vector<32x32xf32> to vector<8x32xf32>
    %cst_89 = arith.constant dense<0.000000e+00> : vector<16x32xf32>
    %215 = tpu.matmul %213, %214, %cst_89 {dimension_numbers = #tpu.dot_dimension_numbers<[1], [0], [0], [1], [0, 0, 1, 1], [], []>} : vector<16x8xf32>, vector<8x32xf32>, vector<16x32xf32> -> vector<16x32xf32>
    %216 = arith.addf %197, %215 : vector<16x32xf32>
    %217 = vector.extract_strided_slice %158 {offsets = [0, 24], sizes = [16, 8], strides = [1, 1]} : vector<16x128xf32> to vector<16x8xf32>
    %218 = vector.extract_strided_slice %158 {offsets = [0, 56], sizes = [16, 8], strides = [1, 1]} : vector<16x128xf32> to vector<16x8xf32>
    %219 = vector.extract_strided_slice %158 {offsets = [0, 88], sizes = [16, 8], strides = [1, 1]} : vector<16x128xf32> to vector<16x8xf32>
    "tpu.trace_start"() <{level = 10 : i32, message = "qd,kd->qk"}> : () -> ()
    %cst_90 = arith.constant dense<0.000000e+00> : vector<16x16xf32>
    %220 = tpu.matmul %217, %218, %cst_90 {dimension_numbers = #tpu.dot_dimension_numbers<[1], [1], [0], [0], [0, 0, 1, 0], [], []>} : vector<16x8xf32>, vector<16x8xf32>, vector<16x16xf32> -> vector<16x16xf32>
    "tpu.trace_stop"() : () -> ()
    %221 = arith.addf %220, %1 : vector<16x16xf32>
    %cst_91 = arith.constant dense<0xFF800000> : vector<16xf32>
    %222 = vector.multi_reduction <maximumf>, %221, %cst_91 [1] : vector<16x16xf32> to vector<16xf32>
    %223 = vector.shape_cast %222 : vector<16xf32> to vector<16x1xf32>
    %224 = vector.broadcast %223 : vector<16x1xf32> to vector<16x16xf32>
    %225 = arith.subf %221, %224 : vector<16x16xf32>
    %226 = math.exp %225 : vector<16x16xf32>
    %cst_92 = arith.constant dense<0.000000e+00> : vector<16xf32>
    %227 = vector.multi_reduction <add>, %226, %cst_92 [1] : vector<16x16xf32> to vector<16xf32>
    %228 = vector.shape_cast %227 : vector<16xf32> to vector<16x1xf32>
    %229 = tpu.reciprocal %228 {approx = true} : vector<16x1xf32> -> vector<16x1xf32>
    %230 = vector.broadcast %229 : vector<16x1xf32> to vector<16x16xf32>
    %231 = arith.mulf %226, %230 : vector<16x16xf32>
    %cst_93 = arith.constant dense<0.000000e+00> : vector<16x8xf32>
    %232 = tpu.matmul %231, %219, %cst_93 {dimension_numbers = #tpu.dot_dimension_numbers<[1], [0], [0], [1], [0, 0, 1, 1], [], []>} : vector<16x16xf32>, vector<16x8xf32>, vector<16x8xf32> -> vector<16x8xf32>
    %233 = vector.extract_strided_slice %160 {offsets = [24, 0], sizes = [8, 32], strides = [1, 1]} : vector<32x32xf32> to vector<8x32xf32>
    %cst_94 = arith.constant dense<0.000000e+00> : vector<16x32xf32>
    %234 = tpu.matmul %232, %233, %cst_94 {dimension_numbers = #tpu.dot_dimension_numbers<[1], [0], [0], [1], [0, 0, 1, 1], [], []>} : vector<16x8xf32>, vector<8x32xf32>, vector<16x32xf32> -> vector<16x32xf32>
    %235 = arith.addf %216, %234 : vector<16x32xf32>
    %c1_95 = arith.constant 1 : index
    %c0_96 = arith.constant 0 : index
    %c0_97 = arith.constant 0 : index
    %236 = vector.load %arg4[%c1_95, %c0_96, %c0_97] : memref<2x1x32xf32, #tpu.memory_space<vmem>>, vector<1x1x32xf32>
    %237 = vector.shape_cast %236 : vector<1x1x32xf32> to vector<1x32xf32>
    %238 = vector.broadcast %237 : vector<1x32xf32> to vector<16x32xf32>
    %239 = arith.addf %235, %238 : vector<16x32xf32>
    %240 = arith.addf %239, %155 : vector<16x32xf32>
    %c1_98 = arith.constant 1 : index
    %c0_99 = arith.constant 0 : index
    %c0_100 = arith.constant 0 : index
    %241 = vector.load %arg5[%c1_98, %c0_99, %c0_100] : memref<2x1x32xf32, #tpu.memory_space<vmem>>, vector<1x1x32xf32>
    %242 = vector.shape_cast %241 : vector<1x1x32xf32> to vector<1x32xf32>
    %c1_101 = arith.constant 1 : index
    %c0_102 = arith.constant 0 : index
    %c0_103 = arith.constant 0 : index
    %243 = vector.load %arg6[%c1_101, %c0_102, %c0_103] : memref<2x1x32xf32, #tpu.memory_space<vmem>>, vector<1x1x32xf32>
    %244 = vector.shape_cast %243 : vector<1x1x32xf32> to vector<1x32xf32>
    %cst_104 = arith.constant dense<0.000000e+00> : vector<16xf32>
    %245 = vector.multi_reduction <add>, %240, %cst_104 [1] : vector<16x32xf32> to vector<16xf32>
    %246 = vector.shape_cast %245 : vector<16xf32> to vector<16x1xf32>
    %cst_105 = arith.constant 3.200000e+01 : f32
    %247 = vector.broadcast %cst_105 : f32 to vector<16x1xf32>
    %248 = arith.divf %246, %247 : vector<16x1xf32>
    %249 = vector.broadcast %248 : vector<16x1xf32> to vector<16x32xf32>
    %250 = arith.subf %240, %249 : vector<16x32xf32>
    %251 = arith.mulf %250, %250 : vector<16x32xf32>
    %cst_106 = arith.constant dense<0.000000e+00> : vector<16xf32>
    %252 = vector.multi_reduction <add>, %251, %cst_106 [1] : vector<16x32xf32> to vector<16xf32>
    %253 = vector.shape_cast %252 : vector<16xf32> to vector<16x1xf32>
    %cst_107 = arith.constant 3.200000e+01 : f32
    %254 = vector.broadcast %cst_107 : f32 to vector<16x1xf32>
    %255 = arith.divf %253, %254 : vector<16x1xf32>
    %256 = vector.broadcast %248 : vector<16x1xf32> to vector<16x32xf32>
    %257 = arith.subf %240, %256 : vector<16x32xf32>
    %cst_108 = arith.constant 9.99999974E-6 : f32
    %258 = vector.broadcast %cst_108 : f32 to vector<16x1xf32>
    %259 = arith.addf %255, %258 : vector<16x1xf32>
    %260 = math.rsqrt %259 : vector<16x1xf32>
    %261 = vector.broadcast %260 : vector<16x1xf32> to vector<16x32xf32>
    %262 = arith.mulf %257, %261 : vector<16x32xf32>
    %263 = vector.broadcast %242 : vector<1x32xf32> to vector<16x32xf32>
    %264 = arith.mulf %262, %263 : vector<16x32xf32>
    %265 = vector.broadcast %244 : vector<1x32xf32> to vector<16x32xf32>
    %266 = arith.addf %264, %265 : vector<16x32xf32>
    %c1_109 = arith.constant 1 : index
    %c0_110 = arith.constant 0 : index
    %c0_111 = arith.constant 0 : index
    %267 = vector.load %arg7[%c1_109, %c0_110, %c0_111] : memref<2x32x128xf32, #tpu.memory_space<vmem>>, vector<1x32x128xf32>
    %268 = vector.shape_cast %267 : vector<1x32x128xf32> to vector<32x128xf32>
    %cst_112 = arith.constant dense<0.000000e+00> : vector<16x128xf32>
    %269 = tpu.matmul %266, %268, %cst_112 {dimension_numbers = #tpu.dot_dimension_numbers<[1], [0], [0], [1], [0, 0, 1, 1], [], []>} : vector<16x32xf32>, vector<32x128xf32>, vector<16x128xf32> -> vector<16x128xf32>
    %c1_113 = arith.constant 1 : index
    %c0_114 = arith.constant 0 : index
    %c0_115 = arith.constant 0 : index
    %270 = vector.load %arg8[%c1_113, %c0_114, %c0_115] : memref<2x1x128xf32, #tpu.memory_space<vmem>>, vector<1x1x128xf32>
    %271 = vector.shape_cast %270 : vector<1x1x128xf32> to vector<1x128xf32>
    %272 = vector.broadcast %271 : vector<1x128xf32> to vector<16x128xf32>
    %273 = arith.addf %269, %272 : vector<16x128xf32>
    %cst_116 = arith.constant 0.000000e+00 : f32
    %274 = vector.broadcast %cst_116 : f32 to vector<16x128xf32>
    %275 = arith.maximumf %273, %274 : vector<16x128xf32>
    %c1_117 = arith.constant 1 : index
    %c0_118 = arith.constant 0 : index
    %c0_119 = arith.constant 0 : index
    %276 = vector.load %arg9[%c1_117, %c0_118, %c0_119] : memref<2x128x32xf32, #tpu.memory_space<vmem>>, vector<1x128x32xf32>
    %277 = vector.shape_cast %276 : vector<1x128x32xf32> to vector<128x32xf32>
    %cst_120 = arith.constant dense<0.000000e+00> : vector<16x32xf32>
    %278 = tpu.matmul %275, %277, %cst_120 {dimension_numbers = #tpu.dot_dimension_numbers<[1], [0], [0], [1], [0, 0, 1, 1], [], []>} : vector<16x128xf32>, vector<128x32xf32>, vector<16x32xf32> -> vector<16x32xf32>
    %c1_121 = arith.constant 1 : index
    %c0_122 = arith.constant 0 : index
    %c0_123 = arith.constant 0 : index
    %279 = vector.load %arg10[%c1_121, %c0_122, %c0_123] : memref<2x1x32xf32, #tpu.memory_space<vmem>>, vector<1x1x32xf32>
    %280 = vector.shape_cast %279 : vector<1x1x32xf32> to vector<1x32xf32>
    %281 = vector.broadcast %280 : vector<1x32xf32> to vector<16x32xf32>
    %282 = arith.addf %278, %281 : vector<16x32xf32>
    %283 = arith.addf %282, %266 : vector<16x32xf32>
    %c1_124 = arith.constant 1 : index
    %c0_125 = arith.constant 0 : index
    %c0_126 = arith.constant 0 : index
    %284 = vector.load %arg11[%c1_124, %c0_125, %c0_126] : memref<2x1x32xf32, #tpu.memory_space<vmem>>, vector<1x1x32xf32>
    %285 = vector.shape_cast %284 : vector<1x1x32xf32> to vector<1x32xf32>
    %c1_127 = arith.constant 1 : index
    %c0_128 = arith.constant 0 : index
    %c0_129 = arith.constant 0 : index
    %286 = vector.load %arg12[%c1_127, %c0_128, %c0_129] : memref<2x1x32xf32, #tpu.memory_space<vmem>>, vector<1x1x32xf32>
    %287 = vector.shape_cast %286 : vector<1x1x32xf32> to vector<1x32xf32>
    %cst_130 = arith.constant dense<0.000000e+00> : vector<16xf32>
    %288 = vector.multi_reduction <add>, %283, %cst_130 [1] : vector<16x32xf32> to vector<16xf32>
    %289 = vector.shape_cast %288 : vector<16xf32> to vector<16x1xf32>
    %cst_131 = arith.constant 3.200000e+01 : f32
    %290 = vector.broadcast %cst_131 : f32 to vector<16x1xf32>
    %291 = arith.divf %289, %290 : vector<16x1xf32>
    %292 = vector.broadcast %291 : vector<16x1xf32> to vector<16x32xf32>
    %293 = arith.subf %283, %292 : vector<16x32xf32>
    %294 = arith.mulf %293, %293 : vector<16x32xf32>
    %cst_132 = arith.constant dense<0.000000e+00> : vector<16xf32>
    %295 = vector.multi_reduction <add>, %294, %cst_132 [1] : vector<16x32xf32> to vector<16xf32>
    %296 = vector.shape_cast %295 : vector<16xf32> to vector<16x1xf32>
    %cst_133 = arith.constant 3.200000e+01 : f32
    %297 = vector.broadcast %cst_133 : f32 to vector<16x1xf32>
    %298 = arith.divf %296, %297 : vector<16x1xf32>
    %299 = vector.broadcast %291 : vector<16x1xf32> to vector<16x32xf32>
    %300 = arith.subf %283, %299 : vector<16x32xf32>
    %cst_134 = arith.constant 9.99999974E-6 : f32
    %301 = vector.broadcast %cst_134 : f32 to vector<16x1xf32>
    %302 = arith.addf %298, %301 : vector<16x1xf32>
    %303 = math.rsqrt %302 : vector<16x1xf32>
    %304 = vector.broadcast %303 : vector<16x1xf32> to vector<16x32xf32>
    %305 = arith.mulf %300, %304 : vector<16x32xf32>
    %306 = vector.broadcast %285 : vector<1x32xf32> to vector<16x32xf32>
    %307 = arith.mulf %305, %306 : vector<16x32xf32>
    %308 = vector.broadcast %287 : vector<1x32xf32> to vector<16x32xf32>
    %309 = arith.addf %307, %308 : vector<16x32xf32>
    %c0_135 = arith.constant 0 : index
    %c0_136 = arith.constant 0 : index
    %310 = vector.load %arg13[%c0_135, %c0_136] : memref<16x32xf32, #tpu.memory_space<vmem>>, vector<16x32xf32>
    tpu.vector_store %arg13[%c0_135, %c0_136], %309 {strides = array<i32>} : memref<16x32xf32, #tpu.memory_space<vmem>>, vector<16x32xf32>,
    return
  }
}

</mosaic_0001>

<bundles_post_ra>
// kernel: encoder_forward.1
= control target key start
LH: loop header
LB: loop body
LE: loop exit
PB: predicated region body
PF: predicated region fallthrough
CT: control target
= control target key end

     0   :  { %vm53_vm0 = vcmask 261120   ;;  %s4619_s0 = inlined_call_operand.vmem [shape: f32[16,32], index: 0, kind: input, shape index: {}]   ;;  %s4620_s1 = inlined_call_operand.vmem [shape: f32[16,16], index: 1, kind: input, shape index: {}]   ;;  %s4621_s2 = inlined_call_operand.vmem [shape: f32[2,32,128], index: 2, kind: input, shape index: {}]   ;;  %s4622_s3 = inlined_call_operand.vmem [shape: f32[2,32,32], index: 3, kind: input, shape index: {}]   ;;  %s4623_s4 = inlined_call_operand.vmem [shape: f32[2,1,32], index: 4, kind: input, shape index: {}]   ;;  %s4624_s5 = inlined_call_operand.vmem [shape: f32[2,1,32], index: 5, kind: input, shape index: {}]   ;;  %s4625_s6 = inlined_call_operand.vmem [shape: f32[2,1,32], index: 6, kind: input, shape index: {}]   ;;  %s4626_s7 = inlined_call_operand.vmem [shape: f32[2,32,128], index: 7, kind: input, shape index: {}]   ;;  %s4627_s8 = inlined_call_operand.vmem [shape: f32[2,1,128], index: 8, kind: input, shape index: {}]   ;;  %s4628_s9 = inlined_call_operand.vmem [shape: f32[2,128,32], index: 9, kind: input, shape index: {}]   ;;  %s4629_s10 = inlined_call_operand.vmem [shape: f32[2,1,32], index: 10, kind: input, shape index: {}]   ;;  %s4630_s11 = inlined_call_operand.vmem [shape: f32[2,1,32], index: 11, kind: input, shape index: {}]   ;;  %s4631_s12 = inlined_call_operand.vmem [shape: f32[2,1,32], index: 12, kind: input, shape index: {}]   ;;  %s4632_s13 = inlined_call_operand.hbm [shape: f32[16,32], index: 13, kind: output, shape index: {}]  }
   0x1   :  { %v49_v0 = vld [vmem:[%s4621_s2] sm:$0xff]  ;;  %v50_v1 = vld [vmem:[%s4621_s2 + $0x8] sm:$0xff]  ;;  %v51_v2 = vld [vmem:[%s4621_s2 + $0x10] sm:$0xff] }
   0x2   :  { %v3633_v3 = vpack.c.bf16 %v50_v1, %v49_v0  ;;  %v52_v4 = vld [vmem:[%s4621_s2 + $0x18] sm:$0xff]  ;;  %v4120_v5 = vld [vmem:[%s4619_s0] sm:$0xff] }
   0x3   :  { %v3637_v6 = vpack.c.bf16 %v52_v4, %v51_v2  ;;  %3375 = vmatprep.mubr.msk.f32.mxu1 %vm53_vm0, %v4120_v5 }
   0x4   :  { %18 = vsyncpa [#allocation3], 0  ;;  %3634 = vmatprep.subr.bf16.mxu1 %v3633_v3  ;;  %v4127_v7 = vld [vmem:[%s4619_s0 + $0x8] sm:$0xff]  ;;  %vm145_vm1 = vcmask 64512   ;;  %s4021_s20 = smov 96   ;;  %v4163_v17 = vld [vmem:[%s4620_s1] sm:$0xff] }
   0x5   :  { %3636 = vmatpush3.bf16.msra.mxu1 %v3633_v3  ;;  %vm4145_vm2 = vmpackc.low %vm145_vm1, %vm145_vm1  ;;  %v4158_v16 = vld [vmem:[%s4620_s1 + $0x8] sm:$0xff]  ;;  %vm229_vm3 = vcmask 130048   ;;  %s4022_s24 = smov 64   ;;  %s4023_s25 = smov 88  }
   0x6   :  { %3638 = vmatprep.subr.bf16.mxu1 %v3637_v6  ;;  %s4024_s26 = smov 120   ;;  %s4025_s27 = smov 56  }
   0x7   :  { %s4026_s28 = smov 80   ;;  %s4027_s29 = smov 112  }
   0x8   :  { %s4635_s30 = smov 104   ;;  %s4029_s14 = smov 72  }
   0x9   :  { %3640 = vmatpush3.bf16.msra.mxu1 %v3637_v6  ;;  %s4634_s19 = smov 48   ;;  %s4633_s0 = smov 40  }
   0xc   :  { %3376 = vmatmul.mubr.msk.f32.vlgmr.msra.gmra.mrb[0].mxu1 %vm53_vm0, %v4127_v7 }
  0xdf   :  { %v4131_v8 = vpop.f32.mrb[0].mxu1 }
  0xe0   :  { %v4133_v9 = vpop.f32.mrb[1].mxu1 }
  0xe1   :  { %3382 = vmatprep.mubr.msk.f32.mxu1 %vm145_vm1, %v4133_v9  ;;  %v4139_v10 = vpack.i.bf16 %v4131_v8, %v4133_v9 }
  0xe3   :  { %3836 = vrot.lane.b32.xlu0 %v4139_v10, %s4021_s20 }
 0x155   :  { %v3837_v11 = vpop.permute.xlu0 %3836 }
 0x156   :  { %v3839_v12 = vunpack.i.h.bf16 %v3837_v11  ;;  %v3838_v13 = vunpack.i.l.bf16 %v3837_v11 }
 0x158   :  { %v3641_v15 = vpack.c.bf16 %v3839_v12, %v3838_v13 }
 0x15a   :  { %3643 = vmatprep.subr.msk.bf16.mxu1 %vm4145_vm2, %v3641_v15 }
 0x15b   :  { %3646 = vmatpush3.bf16.xpose.msk.msra.mxu1 %vm4145_vm2, %v3641_v15 }
 0x162   :  { %3383 = vmatmul.mubr.msk.f32.vlgmr.msra.gmra.mrb[2].mxu1 %vm145_vm1, %v4131_v8 }
 0x235   :  { %v3384_v18 = vpop.f32.mrb[2].mxu1 }
 0x236   :  { %v226_v19 = vadd.f32 %v3384_v18, %v4158_v16  ;;  %v220_v20 = vpop.f32.mrb[3].mxu1 }
 0x237   :  { %v221_v21 = vadd.f32 %v220_v20, %v4163_v17 }
 0x238   :  { %v233_v22 = vsel %vm229_vm3, %v226_v19, -inf }
 0x239   :  { %234 = vmax.xlane.f32.xlu1 %v233_v22  ;;  %v230_v23 = vsel %vm229_vm3, %v221_v21, -inf }
 0x23a   :  { %231 = vmax.xlane.f32.xlu0 %v230_v23 }
 0x24a   :  { %3841 = vrot.lane.b32.xlu1 %v4139_v10, %s4022_s24 }
 0x24e   :  { %3846 = vrot.lane.b32.xlu1 %v4139_v10, %s4023_s25 }
 0x250   :  { %341 = vrot.lane.b32.xlu0 %v4131_v8, %s4024_s26 }
 0x2c6   :  { %v235_v24 = vpop.xlane.xlu1 %234 }
 0x2c7   :  { %v237_v25 = vsub.f32 %v226_v19, %v235_v24  ;;  %v232_v26 = vpop.xlane.xlu0 %231 }
 0x2c8   :  { %v236_v27 = vsub.f32 %v221_v21, %v232_v26 }
 0x2c9   :  { %v240_v28 = vmul.f32 1.442695, %v237_v25 }
 0x2ca   :  { %v238_v29 = vmul.f32 1.442695, %v236_v27  ;;  %v3842_v30 = vpop.permute.xlu1 %3841 }
 0x2cb   :  { %3915 = vpow2.f32 %v240_v28  ;;  %v3844_v31 = vunpack.i.h.bf16 %v3842_v30  ;;  %v3843_v32 = vunpack.i.l.bf16 %v3842_v30  ;;  %v342_v49 = vpop.permute.xlu0 %341 }
 0x2cc   :  { %3917 = vpow2.f32 %v238_v29 }
 0x2cd   :  { %v3647_v33 = vpack.c.bf16 %v3844_v31, %v3843_v32  ;;  %v136_v32 = vld [vmem:[%s4622_s3 + $0x8] sm:$0xff] }
 0x2ce   :  { %v3847_v34 = vpop.permute.xlu1 %3846  ;;  %3406 = vmatprep.subr.mxu0 %v136_v32 }
 0x2cf   :  { %v3849_v35 = vunpack.i.h.bf16 %v3847_v34  ;;  %v3848_v36 = vunpack.i.l.bf16 %v3847_v34  ;;  %3648 = vmatprep.subr.bf16.mxu1 %v3647_v33  ;;  %3407 = vmatpush3.msra.mxu0 %v136_v32 }
 0x2d0   :  { %3650 = vmatpush3.bf16.msra.mxu1 %v3647_v33  ;;  %v135_v33 = vld [vmem:[%s4622_s3] sm:$0xff] }
 0x2d1   :  { %v3651_v37 = vpack.c.bf16 %v3849_v35, %v3848_v36  ;;  %3411 = vmatprep.subr.mxu0 %v135_v33 }
 0x2d3   :  { %3653 = vmatprep.subr.msk.bf16.mxu1 %vm4145_vm2, %v3651_v37 }
 0x2d5   :  { %v3916_v38 = vpop.eup %3915 }
 0x2d6   :  { %v245_v39 = vsel %vm229_vm3, %v3916_v38, 0.0  ;;  %v3918_v40 = vpop.eup %3917 }
 0x2d7   :  { %246 = vadd.xlane.f32.xlu1 %v245_v39  ;;  %v242_v41 = vsel %vm229_vm3, %v3918_v40, 0.0 }
 0x2db   :  { %243 = vadd.xlane.f32.xlu1 %v242_v41 }
 0x2ec   :  { %339 = vrot.lane.b32.xlu1 %v4133_v9, %s4024_s26 }
 0x364   :  { %v247_v42 = vpop.xlane.xlu1 %246 }
 0x365   :  { %3919 = vrcp.f32 %v247_v42 }
 0x368   :  { %v244_v43 = vpop.xlane.xlu1 %243 }
 0x369   :  { %3921 = vrcp.f32 %v244_v43 }
 0x36c   :  { %v340_v48 = vpop.permute.xlu1 %339 }
 0x36f   :  { %v3920_v44 = vpop.eup %3919 }
 0x370   :  { %v251_v47 = vmul.f32 %v3920_v44, %v3916_v38 }
 0x373   :  { %v3922_v45 = vpop.eup %3921 }
 0x374   :  { %v250_v46 = vmul.f32 %v3922_v45, %v3918_v40 }
 0x376   :  { %3389 = vmatprep.mubr.msk.f32.mxu1 %vm229_vm3, %v250_v46 }
 0x377   :  { %3390 = vmatmul.mubr.msk.f32.vlgmr.msra.gmra.mrb[4].mxu1 %vm229_vm3, %v251_v47 }
 0x378   :  { %3656 = vmatpush3.bf16.xpose.msk.msra.mxu1 %vm4145_vm2, %v3651_v37  ;;  %3396 = vmatprep.mubr.msk.f32.mxu1 %vm145_vm1, %v340_v48 }
 0x37f   :  { %3397 = vmatmul.mubr.msk.f32.vlgmr.msra.gmra.mrb[6].mxu1 %vm145_vm1, %v342_v49 }
 0x44a   :  { %v4187_v50 = vpop.f32.mrb[4].mxu1 }
 0x44b   :  { %v4189_v51 = vpop.f32.mrb[5].mxu1 }
 0x452   :  { %v3398_v52 = vpop.f32.mrb[6].mxu1 }
 0x453   :  { %v427_v53 = vadd.f32 %v3398_v52, %v4158_v16  ;;  %v421_v54 = vpop.f32.mrb[7].mxu1 }
 0x454   :  { %v422_v55 = vadd.f32 %v421_v54, %v4163_v17 }
 0x455   :  { %v433_v56 = vsel %vm229_vm3, %v427_v53, -inf }
 0x456   :  { %434 = vmax.xlane.f32.xlu0 %v433_v56  ;;  %v430_v57 = vsel %vm229_vm3, %v422_v55, -inf }
 0x457   :  { %431 = vmax.xlane.f32.xlu1 %v430_v57 }
 0x468   :  { %3851 = vrot.lane.b32.xlu1 %v4139_v10, %s4025_s27 }
 0x46c   :  { %3856 = vrot.lane.b32.xlu0 %v4139_v10, %s4026_s28  ;;  %701 = vrot.lane.b32.xlu1 %v4133_v9, %s4027_s29 }
 0x470   :  { %984 = vrot.lane.b32.xlu0 %v4133_v9, %s4635_s30 }
 0x4e3   :  { %v435_v58 = vpop.xlane.xlu0 %434 }
 0x4e4   :  { %v437_v59 = vsub.f32 %v427_v53, %v435_v58  ;;  %v432_v60 = vpop.xlane.xlu1 %431 }
 0x4e5   :  { %v436_v61 = vsub.f32 %v422_v55, %v432_v60 }
 0x4e6   :  { %v440_v62 = vmul.f32 1.442695, %v437_v59 }
 0x4e7   :  { %v438_v63 = vmul.f32 1.442695, %v436_v61  ;;  %v3857_v0 = vpop.permute.xlu0 %3856  ;;  %v137_v61 = vld [vmem:[%s4622_s3 + $0x10] sm:$0xff] }
 0x4e8   :  { %3923 = vpow2.f32 %v440_v62  ;;  %v3852_v1 = vpop.permute.xlu1 %3851  ;;  %v3859_v2 = vunpack.i.h.bf16 %v3857_v0  ;;  %v3858_v3 = vunpack.i.l.bf16 %v3857_v0 }
 0x4e9   :  { %v3854_v4 = vunpack.i.h.bf16 %v3852_v1  ;;  %v3853_v6 = vunpack.i.l.bf16 %v3852_v1  ;;  %3925 = vpow2.f32 %v438_v63 }
 0x4ea   :  { %v3661_v12 = vpack.c.bf16 %v3859_v2, %v3858_v3 }
 0x4eb   :  { %v3657_v11 = vpack.c.bf16 %v3854_v4, %v3853_v6 }
 0x4ec   :  { %v702_v19 = vpop.permute.xlu1 %701 }
 0x4ed   :  { %3658 = vmatprep.subr.bf16.mxu1 %v3657_v11 }
 0x4ee   :  { %3660 = vmatpush3.bf16.msra.mxu1 %v3657_v11 }
 0x4ef   :  { %3663 = vmatprep.subr.msk.bf16.mxu1 %vm4145_vm2, %v3661_v12 }
 0x4f2   :  { %v3924_v9 = vpop.eup %3923 }
 0x4f3   :  { %v445_v13 = vsel %vm229_vm3, %v3924_v9, 0.0  ;;  %v3926_v15 = vpop.eup %3925 }
 0x4f4   :  { %446 = vadd.xlane.f32.xlu1 %v445_v13  ;;  %v442_v18 = vsel %vm229_vm3, %v3926_v15, 0.0 }
 0x4f8   :  { %443 = vadd.xlane.f32.xlu1 %v442_v18 }
 0x509   :  { %703 = vrot.lane.b32.xlu1 %v4131_v8, %s4027_s29 }
 0x50d   :  { %3861 = vrot.lane.b32.xlu1 %v4139_v10, %s4029_s14 }
 0x511   :  { %986 = vrot.lane.b32.xlu1 %v4131_v8, %s4635_s30  ;;  %v985_v8 = vpop.permute.xlu0 %984  ;;  %s4641_s30 = smov 40  }
 0x581   :  { %v447_v20 = vpop.xlane.xlu1 %446 }
 0x582   :  { %3927 = vrcp.f32 %v447_v20 }
 0x585   :  { %v444_v21 = vpop.xlane.xlu1 %443 }
 0x586   :  { %3929 = vrcp.f32 %v444_v21 }
 0x589   :  { %v704_v22 = vpop.permute.xlu1 %703 }
 0x58c   :  { %v3928_v24 = vpop.eup %3927 }
 0x58d   :  { %v3862_v23 = vpop.permute.xlu1 %3861  ;;  %v451_v29 = vmul.f32 %v3928_v24, %v3924_v9 }
 0x58e   :  { %v3864_v26 = vunpack.i.h.bf16 %v3862_v23  ;;  %v3863_v27 = vunpack.i.l.bf16 %v3862_v23 }
 0x590   :  { %v3930_v25 = vpop.eup %3929  ;;  %v3671_v30 = vpack.c.bf16 %v3864_v26, %v3863_v27 }
 0x591   :  { %v450_v28 = vmul.f32 %v3930_v25, %v3926_v15  ;;  %v987_v31 = vpop.permute.xlu1 %986 }
 0x593   :  { %3403 = vmatprep.mubr.msk.f32.mxu1 %vm229_vm3, %v450_v28 }
 0x594   :  { %3404 = vmatmul.mubr.msk.f32.vlgmr.msra.gmra.mrb[8].mxu1 %vm229_vm3, %v451_v29 }
 0x595   :  { %3666 = vmatpush3.bf16.xpose.msk.msra.mxu1 %vm4145_vm2, %v3661_v12  ;;  %3420 = vmatprep.mubr.msk.f32.mxu1 %vm145_vm1, %v702_v19 }
 0x596   :  { %3673 = vmatprep.subr.msk.bf16.mxu1 %vm4145_vm2, %v3671_v30 }
 0x59c   :  { %3421 = vmatmul.mubr.msk.f32.vlgmr.msra.gmra.mrb[10].mxu1 %vm145_vm1, %v704_v22 }
 0x59d   :  { %3676 = vmatpush3.bf16.xpose.msk.msra.mxu1 %vm4145_vm2, %v3671_v30  ;;  %3439 = vmatprep.mubr.msk.f32.mxu1 %vm145_vm1, %v985_v8 }
 0x5a4   :  { %3440 = vmatmul.mubr.msk.f32.vlgmr.msra.gmra.mrb[12].mxu1 %vm145_vm1, %v987_v31  ;;  %v138_v31 = vld [vmem:[%s4622_s3 + $0x18] sm:$0xff] }
 0x667   :  { %v3405_v34 = vpop.f32.mrb[8].mxu1 }
 0x668   :  { %v530_v35 = vpop.f32.mrb[9].mxu1 }
 0x669   :  { %3408 = vmatprep.mubr.msk.f32.mxu0 %vm145_vm1, %v530_v35  ;;  %v3132_v35 = vld [vmem:[%s4623_s4] ss:$0 sm:$0xff] }
 0x66a   :  { %3409 = vmatmul.mubr.msk.f32.vlgmr.msra.gmra.mrb[0].mxu0 %vm145_vm1, %v3405_v34 }
 0x66b   :  { %3413 = vmatprep.mubr.msk.f32.mxu0 %vm145_vm1, %v4189_v51  ;;  %3412 = vmatpush3.msra.mxu0 %v135_v33 }
 0x66f   :  { %v3422_v36 = vpop.f32.mrb[10].mxu1 }
 0x670   :  { %v789_v37 = vadd.f32 %v3422_v36, %v4158_v16  ;;  %v783_v38 = vpop.f32.mrb[11].mxu1 }
 0x671   :  { %v784_v39 = vadd.f32 %v783_v38, %v4163_v17 }
 0x672   :  { %v795_v40 = vsel %vm229_vm3, %v789_v37, -inf  ;;  %3414 = vmatmul.mubr.msk.f32.vlgmr.msra.gmra.mrb[0].mxu0 %vm145_vm1, %v4187_v50 }
 0x673   :  { %796 = vmax.xlane.f32.xlu1 %v795_v40  ;;  %v792_v41 = vsel %vm229_vm3, %v784_v39, -inf }
 0x674   :  { %793 = vmax.xlane.f32.xlu0 %v792_v41 }
 0x677   :  { %v3441_v42 = vpop.f32.mrb[12].mxu1 }
 0x678   :  { %v1066_v43 = vpop.f32.mrb[13].mxu1  ;;  %v1072_v58 = vadd.f32 %v3441_v42, %v4158_v16 }
 0x67a   :  { %v1078_v60 = vsel %vm229_vm3, %v1072_v58, -inf }
 0x684   :  { %3866 = vrot.lane.b32.xlu1 %v4139_v10, %s4634_s19 }
 0x688   :  { %3871 = vrot.lane.b32.xlu1 %v4139_v10, %s4633_s0  ;;  %v1067_v10 = vadd.f32 %v1066_v43, %v4163_v17 }
 0x68a   :  { %v1075_v59 = vsel %vm229_vm3, %v1067_v10, -inf }
 0x700   :  { %v797_v44 = vpop.xlane.xlu1 %796 }
 0x701   :  { %v799_v45 = vsub.f32 %v789_v37, %v797_v44  ;;  %v794_v46 = vpop.xlane.xlu0 %793 }
 0x702   :  { %v798_v47 = vsub.f32 %v784_v39, %v794_v46 }
 0x703   :  { %v802_v48 = vmul.f32 1.442695, %v799_v45 }
 0x704   :  { %v800_v49 = vmul.f32 1.442695, %v798_v47  ;;  %v3867_v50 = vpop.permute.xlu1 %3866 }
 0x705   :  { %v3869_v51 = vunpack.i.h.bf16 %v3867_v50  ;;  %v3868_v52 = vunpack.i.l.bf16 %v3867_v50 }
 0x706   :  { %3931 = vpow2.f32 %v800_v49 }
 0x707   :  { %v3667_v53 = vpack.c.bf16 %v3869_v51, %v3868_v52  ;;  %3933 = vpow2.f32 %v802_v48  ;;  %v1323_v52 = vld [vmem:[%s4626_s7] sm:$0xff] }
 0x708   :  { %v3872_v3 = vpop.permute.xlu1 %3871 }
 0x709   :  { %3668 = vmatprep.subr.bf16.mxu0 %v3667_v53  ;;  %v3874_v9 = vunpack.i.h.bf16 %v3872_v3  ;;  %v3873_v13 = vunpack.i.l.bf16 %v3872_v3  ;;  %v1424_v3 = vld [vmem:[%s4628_s9 + $0x38] sm:$0xff] }
 0x70a   :  { %3670 = vmatpush3.bf16.msra.mxu0 %v3667_v53  ;;  %v1324_v53 = vld [vmem:[%s4626_s7 + $0x8] sm:$0xff] }
 0x70b   :  { %3430 = vmatprep.subr.mxu0 %v137_v61  ;;  %v3677_v20 = vpack.c.bf16 %v3874_v9, %v3873_v13  ;;  %v1427_v9 = vld [vmem:[%s4628_s9 + $0x50] sm:$0xff]  ;;  %v1428_v13 = vld [vmem:[%s4628_s9 + $0x58] sm:$0xff] }
 0x710   :  { %v3932_v54 = vpop.eup %3931 }
 0x711   :  { %v804_v55 = vsel %vm229_vm3, %v3932_v54, 0.0  ;;  %v3934_v56 = vpop.eup %3933 }
 0x712   :  { %805 = vadd.xlane.f32.xlu0 %v804_v55  ;;  %v807_v57 = vsel %vm229_vm3, %v3934_v56, 0.0  ;;  %v1325_v55 = vld [vmem:[%s4626_s7 + $0x10] sm:$0xff] }
 0x716   :  { %808 = vadd.xlane.f32.xlu0 %v807_v57  ;;  %v1417_v57 = vld [vmem:[%s4628_s9] sm:$0xff] }
 0x71a   :  { %1076 = vmax.xlane.f32.xlu0 %v1075_v59  ;;  %v1419_v59 = vld [vmem:[%s4628_s9 + $0x10] sm:$0xff] }
 0x71e   :  { %1079 = vmax.xlane.f32.xlu0 %v1078_v60 }
 0x79f   :  { %v806_v62 = vpop.xlane.xlu0 %805 }
 0x7a0   :  { %3935 = vrcp.f32 %v806_v62 }
 0x7a3   :  { %v809_v63 = vpop.xlane.xlu0 %808 }
 0x7a4   :  { %3937 = vrcp.f32 %v809_v63  ;;  %v1421_v63 = vld [vmem:[%s4628_s9 + $0x20] sm:$0xff] }
 0x7a7   :  { %v1077_v0 = vpop.xlane.xlu0 %1076 }
 0x7a8   :  { %v1081_v1 = vsub.f32 %v1067_v10, %v1077_v0  ;;  %v1422_v0 = vld [vmem:[%s4628_s9 + $0x28] sm:$0xff] }
 0x7aa   :  { %v3936_v2 = vpop.eup %3935  ;;  %v1083_v4 = vmul.f32 1.442695, %v1081_v1  ;;  %v3697_v1 = vpack.c.bf16 %v1422_v0, %v1421_v63  ;;  %v3142_v63 = vld [vmem:[%s4621_s2 + $0x28] sm:$0xff] }
 0x7ab   :  { %v1080_v6 = vpop.xlane.xlu0 %1079  ;;  %v812_v11 = vmul.f32 %v3936_v2, %v3932_v54  ;;  %v3681_v54 = vpack.c.bf16 %v1324_v53, %v1323_v52  ;;  %v1423_v2 = vld [vmem:[%s4628_s9 + $0x30] sm:$0xff] }
 0x7ac   :  { %3939 = vpow2.f32 %v1083_v4  ;;  %v1082_v12 = vsub.f32 %v1072_v58, %v1080_v6  ;;  %v1418_v58 = vld [vmem:[%s4628_s9 + $0x8] sm:$0xff]  ;;  %v3701_v4 = vpack.c.bf16 %v1424_v3, %v1423_v2  ;;  %v1425_v6 = vld [vmem:[%s4628_s9 + $0x40] sm:$0xff]  ;;  %v3144_v2 = vld [vmem:[%s4621_s2 + $0x38] sm:$0xff] }
 0x7ad   :  { %3427 = vmatprep.mubr.msk.f32.mxu0 %vm229_vm3, %v812_v11  ;;  %3682 = vmatprep.subr.bf16.mxu1 %v3681_v54  ;;  %v3689_v60 = vpack.c.bf16 %v1418_v58, %v1417_v57  ;;  %v1426_v11 = vld [vmem:[%s4628_s9 + $0x48] sm:$0xff] }
 0x7ae   :  { %v3938_v15 = vpop.eup %3937  ;;  %v1085_v18 = vmul.f32 1.442695, %v1082_v12  ;;  %3684 = vmatpush3.bf16.msra.mxu1 %v3681_v54  ;;  %v3705_v12 = vpack.c.bf16 %v1426_v11, %v1425_v6 }
 0x7af   :  { %v813_v19 = vmul.f32 %v3938_v15, %v3934_v56  ;;  %v1326_v56 = vld [vmem:[%s4626_s7 + $0x18] sm:$0xff]  ;;  %v3709_v15 = vpack.c.bf16 %v1428_v13, %v1427_v9 }
 0x7b0   :  { %3941 = vpow2.f32 %v1085_v18  ;;  %v3685_v10 = vpack.c.bf16 %v1326_v56, %v1325_v55  ;;  %v1429_v18 = vld [vmem:[%s4628_s9 + $0x60] sm:$0xff] }
 0x7b1   :  { %3428 = vmatmul.mubr.msk.f32.vlgmr.msra.gmra.mrb[2].mxu0 %vm229_vm3, %v813_v19  ;;  %v1430_v19 = vld [vmem:[%s4628_s9 + $0x68] sm:$0xff] }
 0x7b2   :  { %3431 = vmatpush3.msra.mxu0 %v137_v61  ;;  %3686 = vmatprep.subr.bf16.mxu1 %v3685_v10  ;;  %v1420_v61 = vld [vmem:[%s4628_s9 + $0x18] sm:$0xff] }
 0x7b3   :  { %3678 = vmatprep.subr.bf16.mxu0 %v3677_v20  ;;  %3688 = vmatpush3.bf16.msra.mxu1 %v3685_v10  ;;  %v3693_v62 = vpack.c.bf16 %v1420_v61, %v1419_v59 }
 0x7b6   :  { %v3940_v21 = vpop.eup %3939 }
 0x7b7   :  { %v1087_v22 = vsel %vm229_vm3, %v3940_v21, 0.0 }
 0x7b8   :  { %1088 = vadd.xlane.f32.xlu0 %v1087_v22 }
 0x7ba   :  { %v3942_v23 = vpop.eup %3941 }
 0x7bb   :  { %v1090_v24 = vsel %vm229_vm3, %v3942_v23, 0.0 }
 0x7bc   :  { %1091 = vadd.xlane.f32.xlu0 %v1090_v24 }
 0x845   :  { %v1089_v25 = vpop.xlane.xlu0 %1088 }
 0x846   :  { %3943 = vrcp.f32 %v1089_v25 }
 0x849   :  { %v1092_v26 = vpop.xlane.xlu0 %1091 }
 0x84a   :  { %3945 = vrcp.f32 %v1092_v26 }
 0x850   :  { %v3944_v27 = vpop.eup %3943 }
 0x851   :  { %v1095_v8 = vmul.f32 %v3944_v27, %v3940_v21 }
 0x854   :  { %v3946_v30 = vpop.eup %3945 }
 0x855   :  { %v1096_v32 = vmul.f32 %v3946_v30, %v3942_v23  ;;  %v3134_v30 = vld [vmem:[%s4625_s6] ss:$0 sm:$0xff] }
 0x884   :  { %v3429_v28 = vpop.f32.mrb[2].mxu0 }
 0x885   :  { %v892_v29 = vpop.f32.mrb[3].mxu0 }
 0x886   :  { %3432 = vmatprep.mubr.msk.f32.mxu0 %vm145_vm1, %v892_v29 }
 0x887   :  { %3433 = vmatmul.mubr.msk.f32.vlgmr.msra.gmra.mrb[0].mxu0 %vm145_vm1, %v3429_v28  ;;  %v3133_v28 = vld [vmem:[%s4624_s5] ss:$0 sm:$0xff] }
 0x888   :  { %3680 = vmatpush3.bf16.msra.mxu0 %v3677_v20  ;;  %3446 = vmatprep.mubr.msk.f32.mxu0 %vm229_vm3, %v1095_v8  ;;  %v3713_v20 = vpack.c.bf16 %v1430_v19, %v1429_v18  ;;  %v3139_v18 = vld [vmem:[%s4630_s11] ss:$0 sm:$0xff] }
 0x889   :  { %3449 = vmatprep.subr.mxu0 %v138_v31 }
 0x88b   :  { %3447 = vmatmul.mubr.msk.f32.vlgmr.msra.gmra.mrb[4].mxu0 %vm229_vm3, %v1096_v32 }
 0x88c   :  { %3450 = vmatpush3.msra.mxu0 %v138_v31 }
 0x88d   :  { %3690 = vmatprep.subr.bf16.mxu0 %v3689_v60 }
 0x95e   :  { %v3448_v33 = vpop.f32.mrb[4].mxu0 }
 0x95f   :  { %v1175_v34 = vpop.f32.mrb[5].mxu0 }
 0x960   :  { %3451 = vmatprep.mubr.msk.f32.mxu0 %vm145_vm1, %v1175_v34 }
 0x961   :  { %3452 = vmatmul.mubr.msk.f32.vlgmr.msra.gmra.mrb[0].mxu0 %vm145_vm1, %v3448_v33 }
 0x962   :  { %3692 = vmatpush3.bf16.msra.mxu0 %v3689_v60 }
 0x963   :  { %3694 = vmatprep.subr.bf16.mxu0 %v3693_v62 }
 0x966   :  { %3696 = vmatpush3.bf16.msra.mxu0 %v3693_v62  ;;  %v3141_v62 = vld [vmem:[%s4621_s2 + $0x20] sm:$0xff] }
 0x967   :  { %3698 = vmatprep.subr.bf16.mxu0 %v3697_v1  ;;  %v3721_v0 = vpack.c.bf16 %v3142_v63, %v3141_v62 }
 0x969   :  { %3722 = vmatprep.subr.bf16.mxu1 %v3721_v0 }
 0x96a   :  { %3700 = vmatpush3.bf16.msra.mxu0 %v3697_v1  ;;  %v3143_v1 = vld [vmem:[%s4621_s2 + $0x30] sm:$0xff]  ;;  %s4639_s2 = smov 104  }
 0x96b   :  { %3702 = vmatprep.subr.bf16.mxu0 %v3701_v4  ;;  %v3725_v3 = vpack.c.bf16 %v3144_v2, %v3143_v1 }
 0x96e   :  { %3704 = vmatpush3.bf16.msra.mxu0 %v3701_v4 }
 0x96f   :  { %3706 = vmatprep.subr.bf16.mxu0 %v3705_v12 }
 0x972   :  { %3708 = vmatpush3.bf16.msra.mxu0 %v3705_v12 }
 0x973   :  { %3710 = vmatprep.subr.bf16.mxu0 %v3709_v15 }
 0x976   :  { %3712 = vmatpush3.bf16.msra.mxu0 %v3709_v15 }
 0x977   :  { %3714 = vmatprep.subr.bf16.mxu0 %v3713_v20 }
 0x97a   :  { %3716 = vmatpush3.bf16.msra.mxu0 %v3713_v20  ;;  %v3140_v20 = vld [vmem:[%s4631_s12] ss:$0 sm:$0xff] }
 0xa34   :  { %v3453_v36 = vpop.f32.mrb[0].mxu0 }
 0xa35   :  { %v1275_v37 = vadd.f32 %v3453_v36, %v3132_v35  ;;  %v1256_v38 = vpop.f32.mrb[1].mxu0  ;;  %v1431_v36 = vld [vmem:[%s4628_s9 + $0x70] sm:$0xff] }
 0xa36   :  { %v1274_v39 = vadd.f32 %v3132_v35, %v1256_v38 }
 0xa37   :  { %v1277_v40 = vadd.f32 %v1275_v37, %v4127_v7  ;;  %v1432_v37 = vld [vmem:[%s4628_s9 + $0x78] sm:$0xff] }
 0xa38   :  { %v1276_v41 = vadd.f32 %v1274_v39, %v4120_v5  ;;  %v3717_v38 = vpack.c.bf16 %v1432_v37, %v1431_v36  ;;  %v3135_v39 = vld [vmem:[%s4627_s8] ss:$0 sm:$0xff] }
 0xa39   :  { %v1283_v42 = vsel %vm53_vm0, %v1277_v40, 0.0 }
 0xa3a   :  { %1284 = vadd.xlane.f32.xlu1 %v1283_v42  ;;  %v1280_v43 = vsel %vm53_vm0, %v1276_v41, 0.0  ;;  %3718 = vmatprep.subr.bf16.mxu0 %v3717_v38 }
 0xa3b   :  { %1281 = vadd.xlane.f32.xlu0 %v1280_v43  ;;  %3720 = vmatpush3.bf16.msra.mxu0 %v3717_v38 }
 0xac7   :  { %v1285_v44 = vpop.xlane.xlu1 %1284 }
 0xac8   :  { %v1288_v45 = vmul.f32 0.03125, %v1285_v44  ;;  %v1282_v46 = vpop.xlane.xlu0 %1281 }
 0xac9   :  { %v1287_v47 = vmul.f32 0.03125, %v1282_v46  ;;  %v3138_v46 = vld [vmem:[%s4629_s10] ss:$0 sm:$0xff] }
 0xaca   :  { %v4274_v48 = vsub.f32 %v1277_v40, %v1288_v45 }
 0xacb   :  { %v1289_v49 = vsub.f32 %v1276_v41, %v1287_v47 }
 0xacc   :  { %v1292_v7 = vmul.f32 %v4274_v48, %v4274_v48 }
 0xacd   :  { %v1291_v50 = vmul.f32 %v1289_v49, %v1289_v49 }
 0xace   :  { %v1296_v5 = vsel %vm53_vm0, %v1292_v7, 0.0 }
 0xacf   :  { %v1293_v51 = vsel %vm53_vm0, %v1291_v50, 0.0 }
 0xad0   :  { %1294 = vadd.xlane.f32.xlu0 %v1293_v51 }
 0xad4   :  { %1297 = vadd.xlane.f32.xlu0 %v1296_v5 }
 0xb5d   :  { %v1295_v21 = vpop.xlane.xlu0 %1294 }
 0xb5e   :  { %v1299_v22 = vmul.f32 0.03125, %v1295_v21 }
 0xb60   :  { %v1301_v23 = vadd.f32 1e-05, %v1299_v22 }
 0xb61   :  { %v1298_v24 = vpop.xlane.xlu0 %1297 }
 0xb62   :  { %3947 = vrsqrt.f32 %v1301_v23  ;;  %v1300_v25 = vmul.f32 0.03125, %v1298_v24 }
 0xb64   :  { %v1302_v26 = vadd.f32 1e-05, %v1300_v25 }
 0xb66   :  { %3949 = vrsqrt.f32 %v1302_v26 }
 0xb6c   :  { %v3948_v27 = vpop.eup %3947 }
 0xb6d   :  { %v1305_v29 = vmul.f32 %v3948_v27, %v1289_v49 }
 0xb6f   :  { %v1313_v8 = vmul.f32 %v3133_v28, %v1305_v29 }
 0xb70   :  { %v3950_v31 = vpop.eup %3949 }
 0xb71   :  { %v1306_v32 = vmul.f32 %v3950_v31, %v4274_v48  ;;  %v1321_v33 = vadd.f32 %v3134_v30, %v1313_v8 }
 0xb73   :  { %v1314_v34 = vmul.f32 %v3133_v28, %v1306_v32  ;;  %3462 = vmatprep.mubr.msk.f32.mxu1 %vm53_vm0, %v1321_v33 }
 0xb75   :  { %v1322_v35 = vadd.f32 %v3134_v30, %v1314_v34 }
 0xb77   :  { %3463 = vmatmul.mubr.msk.f32.vlgmr.msra.gmra.mrb[14].mxu1 %vm53_vm0, %v1322_v35 }
 0xb78   :  { %3724 = vmatpush3.bf16.msra.mxu1 %v3721_v0 }
 0xb79   :  { %3726 = vmatprep.subr.bf16.mxu1 %v3725_v3 }
 0xb7c   :  { %3728 = vmatpush3.bf16.msra.mxu1 %v3725_v3 }
 0xc4a   :  { %v3464_v40 = vpop.f32.mrb[14].mxu1 }
 0xc4b   :  { %v1412_v41 = vadd.f32 %v3464_v40, %v3135_v39  ;;  %v1406_v42 = vpop.f32.mrb[15].mxu1 }
 0xc4c   :  { %v1407_v43 = vadd.f32 %v3135_v39, %v1406_v42 }
 0xc4d   :  { %v1416_v45 = vmax.f32 %v1412_v41, 0.0 }
 0xc4e   :  { %v1415_v44 = vmax.f32 %v1407_v43, 0.0 }
 0xc50   :  { %3497 = vmatprep.mubr.f32.mxu0 %v1415_v44 }
 0xc51   :  { %3498 = vmatmul.mubr.f32.vlgmr.msra.gmra.mrb[6].mxu0 %v1416_v45 }
 0xd24   :  { %v3499_v47 = vpop.f32.mrb[6].mxu0 }
 0xd25   :  { %v1506_v48 = vpop.f32.mrb[7].mxu0  ;;  %v1512_v49 = vadd.f32 %v3499_v47, %v3138_v46 }
 0xd26   :  { %v1507_v50 = vadd.f32 %v3138_v46, %v1506_v48 }
 0xd27   :  { %v1516_v5 = vadd.f32 %v1512_v49, %v1322_v35 }
 0xd28   :  { %v1515_v51 = vadd.f32 %v1507_v50, %v1321_v33 }
 0xd29   :  { %v1522_v52 = vsel %vm53_vm0, %v1516_v5, 0.0 }
 0xd2a   :  { %v1519_v7 = vsel %vm53_vm0, %v1515_v51, 0.0 }
 0xd2b   :  { %1520 = vadd.xlane.f32.xlu0 %v1519_v7 }
 0xd2f   :  { %1523 = vadd.xlane.f32.xlu0 %v1522_v52 }
 0xdb8   :  { %v1521_v53 = vpop.xlane.xlu0 %1520 }
 0xdb9   :  { %v1525_v54 = vmul.f32 0.03125, %v1521_v53 }
 0xdbb   :  { %v1527_v55 = vsub.f32 %v1515_v51, %v1525_v54 }
 0xdbc   :  { %v1524_v56 = vpop.xlane.xlu0 %1523 }
 0xdbd   :  { %v1526_v10 = vmul.f32 0.03125, %v1524_v56  ;;  %v1529_v57 = vmul.f32 %v1527_v55, %v1527_v55 }
 0xdbf   :  { %v1528_v58 = vsub.f32 %v1516_v5, %v1526_v10  ;;  %v1531_v59 = vsel %vm53_vm0, %v1529_v57, 0.0 }
 0xdc0   :  { %1532 = vadd.xlane.f32.xlu0 %v1531_v59 }
 0xdc1   :  { %v1530_v60 = vmul.f32 %v1528_v58, %v1528_v58 }
 0xdc3   :  { %v1534_v61 = vsel %vm53_vm0, %v1530_v60, 0.0 }
 0xdc4   :  { %1535 = vadd.xlane.f32.xlu0 %v1534_v61 }
 0xe4d   :  { %v1533_v4 = vpop.xlane.xlu0 %1532 }
 0xe4e   :  { %v1537_v6 = vmul.f32 0.03125, %v1533_v4 }
 0xe50   :  { %v1539_v11 = vadd.f32 1e-05, %v1537_v6 }
 0xe51   :  { %v1536_v12 = vpop.xlane.xlu0 %1535 }
 0xe52   :  { %3951 = vrsqrt.f32 %v1539_v11  ;;  %v1538_v9 = vmul.f32 0.03125, %v1536_v12 }
 0xe54   :  { %v1540_v13 = vadd.f32 1e-05, %v1538_v9 }
 0xe56   :  { %3953 = vrsqrt.f32 %v1540_v13 }
 0xe5c   :  { %v3952_v15 = vpop.eup %3951 }
 0xe5d   :  { %v1543_v19 = vmul.f32 %v3952_v15, %v1527_v55 }
 0xe5f   :  { %v1551_v21 = vmul.f32 %v3139_v18, %v1543_v19 }
 0xe60   :  { %v3954_v22 = vpop.eup %3953 }
 0xe61   :  { %v1544_v23 = vmul.f32 %v3954_v22, %v1528_v58  ;;  %v4377_v24 = vadd.f32 %v3140_v20, %v1551_v21 }
 0xe63   :  { %v1552_v25 = vmul.f32 %v3139_v18, %v1544_v23  ;;  %3508 = vmatprep.mubr.msk.f32.mxu1 %vm53_vm0, %v4377_v24 }
 0xe65   :  { %v4381_v26 = vadd.f32 %v3140_v20, %v1552_v25 }
 0xe67   :  { %3509 = vmatmul.mubr.msk.f32.vlgmr.msra.gmra.mrb[16].mxu1 %vm53_vm0, %v4381_v26 }
 0xf3a   :  { %v4385_v27 = vpop.f32.mrb[16].mxu1 }
 0xf3b   :  { %v4387_v28 = vpop.f32.mrb[17].mxu1 }
 0xf3c   :  { %3515 = vmatprep.mubr.msk.f32.mxu1 %vm145_vm1, %v4387_v28  ;;  %v4393_v29 = vpack.i.bf16 %v4385_v27, %v4387_v28 }
 0xf3e   :  { %3876 = vrot.lane.b32.xlu0 %v4393_v29, %s4021_s20 }
 0xfb0   :  { %v3877_v30 = vpop.permute.xlu0 %3876 }
 0xfb1   :  { %v3879_v8 = vunpack.i.h.bf16 %v3877_v30  ;;  %v3878_v31 = vunpack.i.l.bf16 %v3877_v30 }
 0xfb3   :  { %v3729_v32 = vpack.c.bf16 %v3879_v8, %v3878_v31 }
 0xfb5   :  { %3731 = vmatprep.subr.msk.bf16.mxu1 %vm4145_vm2, %v3729_v32 }
 0xfb6   :  { %3734 = vmatpush3.bf16.xpose.msk.msra.mxu1 %vm4145_vm2, %v3729_v32 }
 0xfbd   :  { %3516 = vmatmul.mubr.msk.f32.vlgmr.msra.gmra.mrb[18].mxu1 %vm145_vm1, %v4385_v27 }
0x1090   :  { %v3517_v33 = vpop.f32.mrb[18].mxu1 }
0x1091   :  { %v1732_v34 = vpop.f32.mrb[19].mxu1  ;;  %v1738_v36 = vadd.f32 %v3517_v33, %v4158_v16 }
0x1092   :  { %v1733_v35 = vadd.f32 %v1732_v34, %v4163_v17 }
0x1093   :  { %v1744_v38 = vsel %vm229_vm3, %v1738_v36, -inf }
0x1094   :  { %v1741_v37 = vsel %vm229_vm3, %v1733_v35, -inf }
0x1095   :  { %1742 = vmax.xlane.f32.xlu1 %v1741_v37 }
0x1099   :  { %1745 = vmax.xlane.f32.xlu1 %v1744_v38 }
0x10aa   :  { %3881 = vrot.lane.b32.xlu1 %v4393_v29, %s4022_s24 }
0x10ae   :  { %3886 = vrot.lane.b32.xlu1 %v4393_v29, %s4023_s25 }
0x10b2   :  { %1850 = vrot.lane.b32.xlu1 %v4387_v28, %s4024_s26 }
0x1122   :  { %v1743_v39 = vpop.xlane.xlu1 %1742 }
0x1123   :  { %v1747_v40 = vsub.f32 %v1733_v35, %v1743_v39 }
0x1125   :  { %v1749_v41 = vmul.f32 1.442695, %v1747_v40 }
0x1126   :  { %v1746_v42 = vpop.xlane.xlu1 %1745 }
0x1127   :  { %3955 = vpow2.f32 %v1749_v41  ;;  %v1748_v43 = vsub.f32 %v1738_v36, %v1746_v42 }
0x1129   :  { %v1751_v44 = vmul.f32 1.442695, %v1748_v43 }
0x112a   :  { %v3882_v45 = vpop.permute.xlu1 %3881 }
0x112b   :  { %3957 = vpow2.f32 %v1751_v44  ;;  %v3884_v46 = vunpack.i.h.bf16 %v3882_v45  ;;  %v3883_v47 = vunpack.i.l.bf16 %v3882_v45  ;;  %v3148_v45 = vld [vmem:[%s4622_s3 + $0x28] sm:$0xff] }
0x112c   :  { %3539 = vmatprep.subr.mxu0 %v3148_v45 }
0x112d   :  { %v3735_v48 = vpack.c.bf16 %v3884_v46, %v3883_v47  ;;  %3540 = vmatpush3.msra.mxu0 %v3148_v45  ;;  %v3147_v46 = vld [vmem:[%s4622_s3 + $0x20] sm:$0xff] }
0x112e   :  { %v3887_v49 = vpop.permute.xlu1 %3886  ;;  %3544 = vmatprep.subr.mxu0 %v3147_v46 }
0x112f   :  { %v3889_v50 = vunpack.i.h.bf16 %v3887_v49  ;;  %v3888_v51 = vunpack.i.l.bf16 %v3887_v49  ;;  %3736 = vmatprep.subr.bf16.mxu1 %v3735_v48  ;;  %v3995_v49 = vld [vmem:[%s4620_s1 + $0x8] sm:$0xff] }
0x1130   :  { %3738 = vmatpush3.bf16.msra.mxu1 %v3735_v48 }
0x1131   :  { %v3956_v7 = vpop.eup %3955  ;;  %v3739_v5 = vpack.c.bf16 %v3889_v50, %v3888_v51 }
0x1132   :  { %v1753_v52 = vsel %vm229_vm3, %v3956_v7, 0.0  ;;  %v1851_v55 = vpop.permute.xlu1 %1850 }
0x1133   :  { %1754 = vadd.xlane.f32.xlu1 %v1753_v52  ;;  %3741 = vmatprep.subr.msk.bf16.mxu1 %vm4145_vm2, %v3739_v5 }
0x1135   :  { %v3958_v53 = vpop.eup %3957 }
0x1136   :  { %v1756_v54 = vsel %vm229_vm3, %v3958_v53, 0.0 }
0x1137   :  { %1757 = vadd.xlane.f32.xlu0 %v1756_v54 }
0x1144   :  { %1852 = vrot.lane.b32.xlu1 %v4385_v27, %s4024_s26 }
0x11c0   :  { %v1755_v56 = vpop.xlane.xlu1 %1754 }
0x11c1   :  { %3959 = vrcp.f32 %v1755_v56 }
0x11c4   :  { %v1758_v10 = vpop.xlane.xlu0 %1757  ;;  %v1853_v61 = vpop.permute.xlu1 %1852 }
0x11c5   :  { %3961 = vrcp.f32 %v1758_v10 }
0x11cb   :  { %v3960_v57 = vpop.eup %3959 }
0x11cc   :  { %v1761_v58 = vmul.f32 %v3960_v57, %v3956_v7  ;;  %v3996_v7 = vld [vmem:[%s4620_s1] sm:$0xff]  ;;  %s4640_s1 = smov 48  }
0x11ce   :  { %3522 = vmatprep.mubr.msk.f32.mxu1 %vm229_vm3, %v1761_v58 }
0x11cf   :  { %v3962_v59 = vpop.eup %3961 }
0x11d0   :  { %v1762_v60 = vmul.f32 %v3962_v59, %v3958_v53 }
0x11d2   :  { %3523 = vmatmul.mubr.msk.f32.vlgmr.msra.gmra.mrb[20].mxu1 %vm229_vm3, %v1762_v60 }
0x11d3   :  { %3744 = vmatpush3.bf16.xpose.msk.msra.mxu1 %vm4145_vm2, %v3739_v5  ;;  %3529 = vmatprep.mubr.msk.f32.mxu1 %vm145_vm1, %v1851_v55 }
0x11da   :  { %3530 = vmatmul.mubr.msk.f32.vlgmr.msra.gmra.mrb[22].mxu1 %vm145_vm1, %v1853_v61 }
0x12a5   :  { %v4425_v62 = vpop.f32.mrb[20].mxu1 }
0x12a6   :  { %v4427_v63 = vpop.f32.mrb[21].mxu1 }
0x12ad   :  { %v3531_v0 = vpop.f32.mrb[22].mxu1 }
0x12ae   :  { %v1938_v1 = vadd.f32 %v3531_v0, %v4158_v16  ;;  %v1932_v2 = vpop.f32.mrb[23].mxu1 }
0x12af   :  { %v1933_v3 = vadd.f32 %v1932_v2, %v4163_v17 }
0x12b0   :  { %v1944_v4 = vsel %vm229_vm3, %v1938_v1, -inf }
0x12b1   :  { %1945 = vmax.xlane.f32.xlu0 %v1944_v4  ;;  %v1941_v6 = vsel %vm229_vm3, %v1933_v3, -inf }
0x12b2   :  { %1942 = vmax.xlane.f32.xlu1 %v1941_v6 }
0x12c3   :  { %2212 = vrot.lane.b32.xlu1 %v4387_v28, %s4027_s29 }
0x12c7   :  { %3891 = vrot.lane.b32.xlu0 %v4393_v29, %s4025_s27 }
0x133e   :  { %v1946_v11 = vpop.xlane.xlu0 %1945 }
0x133f   :  { %v1948_v12 = vsub.f32 %v1938_v1, %v1946_v11  ;;  %v1943_v9 = vpop.xlane.xlu1 %1942 }
0x1340   :  { %v1947_v13 = vsub.f32 %v1933_v3, %v1943_v9 }
0x1341   :  { %v1951_v16 = vmul.f32 1.442695, %v1948_v12 }
0x1342   :  { %v1949_v15 = vmul.f32 1.442695, %v1947_v13  ;;  %v3892_v18 = vpop.permute.xlu0 %3891 }
0x1343   :  { %3963 = vpow2.f32 %v1951_v16  ;;  %v3894_v17 = vunpack.i.h.bf16 %v3892_v18  ;;  %v3893_v19 = vunpack.i.l.bf16 %v3892_v18 }
0x1344   :  { %3965 = vpow2.f32 %v1949_v15 }
0x1345   :  { %v3745_v20 = vpack.c.bf16 %v3894_v17, %v3893_v19 }
0x1347   :  { %3746 = vmatprep.subr.bf16.mxu1 %v3745_v20 }
0x1348   :  { %3748 = vmatpush3.bf16.msra.mxu1 %v3745_v20 }
0x134d   :  { %v3964_v21 = vpop.eup %3963 }
0x134e   :  { %v1956_v22 = vsel %vm229_vm3, %v3964_v21, 0.0  ;;  %v3966_v23 = vpop.eup %3965 }
0x134f   :  { %1957 = vadd.xlane.f32.xlu0 %v1956_v22  ;;  %v1953_v25 = vsel %vm229_vm3, %v3966_v23, 0.0 }
0x1353   :  { %1954 = vadd.xlane.f32.xlu0 %v1953_v25 }
0x1369   :  { %3896 = vrot.lane.b32.xlu0 %v4393_v29, %s4026_s28 }
0x136d   :  { %2214 = vrot.lane.b32.xlu0 %v4385_v27, %s4027_s29 }
0x1371   :  { %3901 = vrot.lane.b32.xlu0 %v4393_v29, %s4029_s14 }
0x1375   :  { %2495 = vrot.lane.b32.xlu0 %v4387_v28, %s4639_s2 }
0x1379   :  { %2497 = vrot.lane.b32.xlu0 %v4385_v27, %s4639_s2  ;;  %v2213_v27 = vpop.permute.xlu1 %2212 }
0x13dc   :  { %v1958_v30 = vpop.xlane.xlu0 %1957 }
0x13dd   :  { %3967 = vrcp.f32 %v1958_v30 }
0x13e0   :  { %v1955_v8 = vpop.xlane.xlu0 %1954 }
0x13e1   :  { %3969 = vrcp.f32 %v1955_v8 }
0x13e4   :  { %v3897_v31 = vpop.permute.xlu0 %3896 }
0x13e5   :  { %v3899_v32 = vunpack.i.h.bf16 %v3897_v31  ;;  %v3898_v33 = vunpack.i.l.bf16 %v3897_v31 }
0x13e7   :  { %v3749_v34 = vpack.c.bf16 %v3899_v32, %v3898_v33  ;;  %v3968_v36 = vpop.eup %3967 }
0x13e8   :  { %v2215_v35 = vpop.permute.xlu0 %2214  ;;  %v1962_v28 = vmul.f32 %v3968_v36, %v3964_v21 }
0x13e9   :  { %3751 = vmatprep.subr.msk.bf16.mxu1 %vm4145_vm2, %v3749_v34 }
0x13eb   :  { %v3970_v37 = vpop.eup %3969 }
0x13ec   :  { %v3902_v38 = vpop.permute.xlu0 %3901  ;;  %v1961_v39 = vmul.f32 %v3970_v37, %v3966_v23 }
0x13ed   :  { %v3904_v40 = vunpack.i.h.bf16 %v3902_v38  ;;  %v3903_v41 = vunpack.i.l.bf16 %v3902_v38 }
0x13ee   :  { %3536 = vmatprep.mubr.msk.f32.mxu1 %vm229_vm3, %v1961_v39 }
0x13ef   :  { %v3759_v42 = vpack.c.bf16 %v3904_v40, %v3903_v41  ;;  %3537 = vmatmul.mubr.msk.f32.vlgmr.msra.gmra.mrb[24].mxu1 %vm229_vm3, %v1962_v28 }
0x13f0   :  { %3754 = vmatpush3.bf16.xpose.msk.msra.mxu1 %vm4145_vm2, %v3749_v34  ;;  %3553 = vmatprep.mubr.msk.f32.mxu1 %vm145_vm1, %v2213_v27  ;;  %v2496_v43 = vpop.permute.xlu0 %2495  ;;  %v3149_v34 = vld [vmem:[%s4622_s3 + $0x30] sm:$0xff] }
0x13f1   :  { %3761 = vmatprep.subr.msk.bf16.mxu1 %vm4145_vm2, %v3759_v42 }
0x13f4   :  { %v2498_v44 = vpop.permute.xlu0 %2497 }
0x13f7   :  { %3554 = vmatmul.mubr.msk.f32.vlgmr.msra.gmra.mrb[26].mxu1 %vm145_vm1, %v2215_v35 }
0x13f8   :  { %3764 = vmatpush3.bf16.xpose.msk.msra.mxu1 %vm4145_vm2, %v3759_v42  ;;  %3572 = vmatprep.mubr.msk.f32.mxu1 %vm145_vm1, %v2496_v43  ;;  %v3150_v43 = vld [vmem:[%s4622_s3 + $0x38] sm:$0xff] }
0x13ff   :  { %3573 = vmatmul.mubr.msk.f32.vlgmr.msra.gmra.mrb[28].mxu1 %vm145_vm1, %v2498_v44 }
0x14c2   :  { %v3538_v47 = vpop.f32.mrb[24].mxu1 }
0x14c3   :  { %v2041_v48 = vpop.f32.mrb[25].mxu1 }
0x14c4   :  { %3541 = vmatprep.mubr.msk.f32.mxu0 %vm145_vm1, %v2041_v48 }
0x14c5   :  { %3542 = vmatmul.mubr.msk.f32.vlgmr.msra.gmra.mrb[8].mxu0 %vm145_vm1, %v3538_v47  ;;  %v3184_v47 = vld [vmem:[%s4623_s4 + $0x1] ss:$0 sm:$0xff]  ;;  %s4032_s4 = smov [#allocation2]  }
0x14c6   :  { %3546 = vmatprep.mubr.msk.f32.mxu0 %vm145_vm1, %v4427_v63  ;;  %3545 = vmatpush3.msra.mxu0 %v3147_v46  ;;  %s3087_s17 = sshll.u32 %s4032_s4, 4  ;;  %s3088_s17 = int_to_ptr.vmem [resolvable:$true] %s3087_s17 }
0x14c7   :  { %s3997_s18 = scalar_lea.vmem %s3088_s17, 256  ;;  %p4002_p1 = scmp.lt.s32.totalorder %s3088_s17, %s3088_s17 }
0x14c8   :  { %p3998_p0 = scmp.ne.s32.totalorder %s3088_s17, %s3997_s18  ;;  %p4003_p2 = scmp.lt.s32.totalorder %s3997_s18, %s3997_s18 }
0x14ca   :  { %v3555_v14 = vpop.f32.mrb[26].mxu1  ;;  %p4004_p3 = por %p4003_p2, %p4002_p1 }
0x14cb   :  { %v2300_v50 = vadd.f32 %v3995_v49, %v3555_v14  ;;  %v2294_v51 = vpop.f32.mrb[27].mxu1 }
0x14cc   :  { %v2295_v5 = vadd.f32 %v3996_v7, %v2294_v51  ;;  %p4005_p4 = pnand %p4004_p3, %p3998_p0 }
0x14cd   :  { %3547 = vmatmul.mubr.msk.f32.vlgmr.msra.gmra.mrb[8].mxu0 %vm145_vm1, %v4425_v62  ;;  %v2306_v52 = vsel %vm229_vm3, %v2300_v50, -inf }
0x14ce   :  { %2307 = vmax.xlane.f32.xlu0 %v2306_v52  ;;  %v2303_v53 = vsel %vm229_vm3, %v2295_v5, -inf }
0x14cf   :  { %2304 = vmax.xlane.f32.xlu1 %v2303_v53 }
0x14d2   :  { %v3574_v54 = vpop.f32.mrb[28].mxu1 }
0x14d3   :  { %v2577_v55 = vpop.f32.mrb[29].mxu1  ;;  %v2583_v2 = vadd.f32 %v3995_v49, %v3574_v54 }
0x14d4   :  { %v2578_v0 = vadd.f32 %v3996_v7, %v2577_v55 }
0x14d5   :  { %v2589_v4 = vsel %vm229_vm3, %v2583_v2, -inf }
0x14d6   :  { %v2586_v3 = vsel %vm229_vm3, %v2578_v0, -inf }
0x155b   :  { %v2308_v56 = vpop.xlane.xlu0 %2307 }
0x155c   :  { %v2310_v10 = vsub.f32 %v2300_v50, %v2308_v56  ;;  %v2305_v57 = vpop.xlane.xlu1 %2304 }
0x155d   :  { %v2309_v58 = vsub.f32 %v2295_v5, %v2305_v57 }
0x155e   :  { %v2313_v59 = vmul.f32 1.442695, %v2310_v10 }
0x155f   :  { %v2311_v60 = vmul.f32 1.442695, %v2309_v58 }
0x1560   :  { %3971 = vpow2.f32 %v2313_v59 }
0x1561   :  { %3973 = vpow2.f32 %v2311_v60  ;;  %v3189_v60 = vld [vmem:[%s4626_s7 + $0x20] sm:$0xff] }
0x156a   :  { %v3972_v61 = vpop.eup %3971 }
0x156b   :  { %v3974_v63 = vpop.eup %3973  ;;  %v2318_v62 = vsel %vm229_vm3, %v3972_v61, 0.0 }
0x156c   :  { %2319 = vadd.xlane.f32.xlu1 %v2318_v62  ;;  %v2315_v1 = vsel %vm229_vm3, %v3974_v63, 0.0  ;;  %v3192_v62 = vld [vmem:[%s4626_s7 + $0x38] sm:$0xff] }
0x156d   :  { %2316 = vadd.xlane.f32.xlu0 %v2315_v1 }
0x1570   :  { %2587 = vmax.xlane.f32.xlu1 %v2586_v3  ;;  %v3198_v3 = vld [vmem:[%s4628_s9 + $0x88] sm:$0xff] }
0x1574   :  { %2590 = vmax.xlane.f32.xlu1 %v2589_v4  ;;  %v3199_v4 = vld [vmem:[%s4628_s9 + $0x90] sm:$0xff] }
0x1583   :  { %3906 = vrot.lane.b32.xlu0 %v4393_v29, %s4640_s1 }
0x15f9   :  { %v2320_v6 = vpop.xlane.xlu1 %2319 }
0x15fa   :  { %3975 = vrcp.f32 %v2320_v6  ;;  %v2317_v11 = vpop.xlane.xlu0 %2316 }
0x15fb   :  { %3977 = vrcp.f32 %v2317_v11  ;;  %v3200_v11 = vld [vmem:[%s4628_s9 + $0x98] sm:$0xff] }
0x15fd   :  { %v2588_v12 = vpop.xlane.xlu1 %2587 }
0x15fe   :  { %v3907_v9 = vpop.permute.xlu0 %3906  ;;  %v2592_v15 = vsub.f32 %v2578_v0, %v2588_v12  ;;  %v3191_v0 = vld [vmem:[%s4626_s7 + $0x30] sm:$0xff]  ;;  %v3781_v12 = vpack.c.bf16 %v3200_v11, %v3199_v4 }
0x15ff   :  { %v3909_v13 = vunpack.i.h.bf16 %v3907_v9  ;;  %v3908_v16 = vunpack.i.l.bf16 %v3907_v9  ;;  %v3773_v1 = vpack.c.bf16 %v3192_v62, %v3191_v0  ;;  %v3201_v9 = vld [vmem:[%s4628_s9 + $0xa0] sm:$0xff] }
0x1600   :  { %v2594_v21 = vmul.f32 1.442695, %v2592_v15  ;;  %v3203_v15 = vld [vmem:[%s4628_s9 + $0xb0] sm:$0xff] }
0x1601   :  { %v3755_v18 = vpack.c.bf16 %v3909_v13, %v3908_v16  ;;  %v2591_v17 = vpop.xlane.xlu1 %2590  ;;  %v3202_v13 = vld [vmem:[%s4628_s9 + $0xa8] sm:$0xff] }
0x1602   :  { %v2593_v19 = vsub.f32 %v2583_v2, %v2591_v17  ;;  %v3197_v2 = vld [vmem:[%s4628_s9 + $0x80] sm:$0xff]  ;;  %v3785_v16 = vpack.c.bf16 %v3202_v13, %v3201_v9 }
0x1603   :  { %3756 = vmatprep.subr.bf16.mxu0 %v3755_v18  ;;  %v3777_v6 = vpack.c.bf16 %v3198_v3, %v3197_v2 }
0x1604   :  { %v3976_v20 = vpop.eup %3975  ;;  %v2596_v22 = vmul.f32 1.442695, %v2593_v19  ;;  %3758 = vmatpush3.bf16.msra.mxu0 %v3755_v18  ;;  %v3204_v18 = vld [vmem:[%s4628_s9 + $0xb8] sm:$0xff]  ;;  %v3205_v19 = vld [vmem:[%s4628_s9 + $0xc0] sm:$0xff] }
0x1605   :  { %v3978_v23 = vpop.eup %3977  ;;  %v2324_v30 = vmul.f32 %v3976_v20, %v3972_v61  ;;  %3563 = vmatprep.subr.mxu0 %v3149_v34  ;;  %v3190_v61 = vld [vmem:[%s4626_s7 + $0x28] sm:$0xff]  ;;  %v3789_v17 = vpack.c.bf16 %v3204_v18, %v3203_v15  ;;  %v3217_v15 = vld [vmem:[%s4630_s11 + $0x1] ss:$0 sm:$0xff] }
0x1606   :  { %3979 = vpow2.f32 %v2596_v22  ;;  %v2323_v25 = vmul.f32 %v3978_v23, %v3974_v63  ;;  %v3769_v63 = vpack.c.bf16 %v3190_v61, %v3189_v60  ;;  %v3206_v20 = vld [vmem:[%s4628_s9 + $0xc8] sm:$0xff]  ;;  %v3207_v22 = vld [vmem:[%s4628_s9 + $0xd0] sm:$0xff]  ;;  %v3208_v23 = vld [vmem:[%s4628_s9 + $0xd8] sm:$0xff] }
0x1607   :  { %3981 = vpow2.f32 %v2594_v21  ;;  %v3793_v21 = vpack.c.bf16 %v3206_v20, %v3205_v19 }
0x1608   :  { %3560 = vmatprep.mubr.msk.f32.mxu0 %vm229_vm3, %v2323_v25  ;;  %3770 = vmatprep.subr.bf16.mxu1 %v3769_v63  ;;  %v3797_v25 = vpack.c.bf16 %v3208_v23, %v3207_v22 }
0x1609   :  { %3561 = vmatmul.mubr.msk.f32.vlgmr.msra.gmra.mrb[10].mxu0 %vm229_vm3, %v2324_v30  ;;  %3772 = vmatpush3.bf16.msra.mxu1 %v3769_v63  ;;  %v3209_v30 = vld [vmem:[%s4628_s9 + $0xe0] sm:$0xff] }
0x160a   :  { %3564 = vmatpush3.msra.mxu0 %v3149_v34  ;;  %3774 = vmatprep.subr.bf16.mxu1 %v3773_v1 }
0x160d   :  { %3776 = vmatpush3.bf16.msra.mxu1 %v3773_v1 }
0x1610   :  { %v3980_v8 = vpop.eup %3979 }
0x1611   :  { %v2601_v31 = vsel %vm229_vm3, %v3980_v8, 0.0  ;;  %v3982_v32 = vpop.eup %3981 }
0x1612   :  { %2602 = vadd.xlane.f32.xlu1 %v2601_v31  ;;  %v2598_v33 = vsel %vm229_vm3, %v3982_v32, 0.0 }
0x1616   :  { %2599 = vadd.xlane.f32.xlu1 %v2598_v33 }
0x1627   :  { %3911 = vrot.lane.b32.xlu1 %v4393_v29, %s4641_s30 }
0x169f   :  { %v2603_v35 = vpop.xlane.xlu1 %2602 }
0x16a3   :  { %v2600_v36 = vpop.xlane.xlu1 %2599 }
0x16a4   :  { %3983 = vrcp.f32 %v2600_v36 }
0x16a5   :  { %3985 = vrcp.f32 %v2603_v35 }
0x16a7   :  { %v3912_v37 = vpop.permute.xlu1 %3911 }
0x16a8   :  { %v3914_v38 = vunpack.i.h.bf16 %v3912_v37  ;;  %v3913_v39 = vunpack.i.l.bf16 %v3912_v37 }
0x16aa   :  { %v3765_v28 = vpack.c.bf16 %v3914_v38, %v3913_v39  ;;  %v3187_v39 = vld [vmem:[%s4624_s5 + $0x1] ss:$0 sm:$0xff] }
0x16ac   :  { %3766 = vmatprep.subr.bf16.mxu0 %v3765_v28 }
0x16ae   :  { %v3984_v40 = vpop.eup %3983 }
0x16af   :  { %v3986_v42 = vpop.eup %3985  ;;  %v2606_v29 = vmul.f32 %v3984_v40, %v3982_v32  ;;  %v3188_v40 = vld [vmem:[%s4625_s6 + $0x1] ss:$0 sm:$0xff] }
0x16b0   :  { %v2607_v44 = vmul.f32 %v3986_v42, %v3980_v8  ;;  %v3210_v8 = vld [vmem:[%s4628_s9 + $0xe8] sm:$0xff] }
0x16b1   :  { %v3801_v31 = vpack.c.bf16 %v3210_v8, %v3209_v30 }
0x16dc   :  { %v3562_v41 = vpop.f32.mrb[10].mxu0 }
0x16dd   :  { %v2403_v27 = vpop.f32.mrb[11].mxu0 }
0x16de   :  { %3565 = vmatprep.mubr.msk.f32.mxu0 %vm145_vm1, %v2403_v27 }
0x16df   :  { %3566 = vmatmul.mubr.msk.f32.vlgmr.msra.gmra.mrb[8].mxu0 %vm145_vm1, %v3562_v41 }
0x16e0   :  { %3768 = vmatpush3.bf16.msra.mxu0 %v3765_v28  ;;  %3579 = vmatprep.mubr.msk.f32.mxu0 %vm229_vm3, %v2606_v29 }
0x16e1   :  { %3582 = vmatprep.subr.mxu0 %v3150_v43 }
0x16e3   :  { %3580 = vmatmul.mubr.msk.f32.vlgmr.msra.gmra.mrb[12].mxu0 %vm229_vm3, %v2607_v44 }
0x16e4   :  { %3583 = vmatpush3.msra.mxu0 %v3150_v43 }
0x16e5   :  { %3778 = vmatprep.subr.bf16.mxu0 %v3777_v6 }
0x17b6   :  { %v3581_v45 = vpop.f32.mrb[12].mxu0 }
0x17b7   :  { %v2686_v46 = vpop.f32.mrb[13].mxu0 }
0x17b8   :  { %3584 = vmatprep.mubr.msk.f32.mxu0 %vm145_vm1, %v2686_v46  ;;  %v3212_v46 = vld [vmem:[%s4628_s9 + $0xf8] sm:$0xff] }
0x17b9   :  { %3585 = vmatmul.mubr.msk.f32.vlgmr.msra.gmra.mrb[8].mxu0 %vm145_vm1, %v3581_v45  ;;  %v3211_v45 = vld [vmem:[%s4628_s9 + $0xf0] sm:$0xff] }
0x17ba   :  { %3780 = vmatpush3.bf16.msra.mxu0 %v3777_v6 }
0x17bb   :  { %3782 = vmatprep.subr.bf16.mxu0 %v3781_v12 }
0x17be   :  { %3784 = vmatpush3.bf16.msra.mxu0 %v3781_v12 }
0x17bf   :  { %3786 = vmatprep.subr.bf16.mxu0 %v3785_v16 }
0x17c2   :  { %3788 = vmatpush3.bf16.msra.mxu0 %v3785_v16 }
0x17c3   :  { %3790 = vmatprep.subr.bf16.mxu0 %v3789_v17 }
0x17c6   :  { %3792 = vmatpush3.bf16.msra.mxu0 %v3789_v17  ;;  %v3218_v17 = vld [vmem:[%s4631_s12 + $0x1] ss:$0 sm:$0xff] }
0x17c7   :  { %3794 = vmatprep.subr.bf16.mxu0 %v3793_v21 }
0x17ca   :  { %3796 = vmatpush3.bf16.msra.mxu0 %v3793_v21 }
0x17cb   :  { %3798 = vmatprep.subr.bf16.mxu0 %v3797_v25 }
0x17ce   :  { %3800 = vmatpush3.bf16.msra.mxu0 %v3797_v25 }
0x17cf   :  { %3802 = vmatprep.subr.bf16.mxu0 %v3801_v31 }
0x17d2   :  { %3804 = vmatpush3.bf16.msra.mxu0 %v3801_v31 }
0x188c   :  { %v3586_v48 = vpop.f32.mrb[8].mxu0 }
0x188d   :  { %v2787_v14 = vadd.f32 %v3586_v48, %v3184_v47  ;;  %v2767_v49 = vpop.f32.mrb[9].mxu0  ;;  %v3194_v48 = vld [vmem:[%s4627_s8 + $0x1] ss:$0 sm:$0xff] }
0x188e   :  { %v2786_v50 = vadd.f32 %v3184_v47, %v2767_v49  ;;  %v3805_v47 = vpack.c.bf16 %v3212_v46, %v3211_v45 }
0x188f   :  { %v2789_v51 = vadd.f32 %v2787_v14, %v4381_v26 }
0x1890   :  { %v2788_v7 = vadd.f32 %v2786_v50, %v4377_v24  ;;  %3806 = vmatprep.subr.bf16.mxu0 %v3805_v47 }
0x1891   :  { %v2797_v5 = vsel %vm53_vm0, %v2789_v51, 0.0  ;;  %3808 = vmatpush3.bf16.msra.mxu0 %v3805_v47 }
0x1892   :  { %2798 = vadd.xlane.f32.xlu1 %v2797_v5  ;;  %v2794_v52 = vsel %vm53_vm0, %v2788_v7, 0.0 }
0x1893   :  { %2795 = vadd.xlane.f32.xlu0 %v2794_v52  ;;  %v3214_v52 = vld [vmem:[%s4629_s10 + $0x1] ss:$0 sm:$0xff] }
0x191f   :  { %v2799_v53 = vpop.xlane.xlu1 %2798 }
0x1920   :  { %v2801_v54 = vmul.f32 0.03125, %v2799_v53  ;;  %v2796_v55 = vpop.xlane.xlu0 %2795 }
0x1921   :  { %v2800_v56 = vmul.f32 0.03125, %v2796_v55 }
0x1922   :  { %v4514_v10 = vsub.f32 %v2789_v51, %v2801_v54 }
0x1923   :  { %v2802_v57 = vsub.f32 %v2788_v7, %v2800_v56 }
0x1924   :  { %v2805_v26 = vmul.f32 %v4514_v10, %v4514_v10 }
0x1925   :  { %v2804_v58 = vmul.f32 %v2802_v57, %v2802_v57 }
0x1926   :  { %v2809_v24 = vsel %vm53_vm0, %v2805_v26, 0.0 }
0x1927   :  { %v2806_v59 = vsel %vm53_vm0, %v2804_v58, 0.0 }
0x1928   :  { %2807 = vadd.xlane.f32.xlu0 %v2806_v59 }
0x192c   :  { %2810 = vadd.xlane.f32.xlu0 %v2809_v24 }
0x19b5   :  { %v2808_v32 = vpop.xlane.xlu0 %2807 }
0x19b6   :  { %v2812_v33 = vmul.f32 0.03125, %v2808_v32 }
0x19b8   :  { %v2814_v34 = vadd.f32 1e-05, %v2812_v33 }
0x19b9   :  { %v2811_v35 = vpop.xlane.xlu0 %2810 }
0x19ba   :  { %3987 = vrsqrt.f32 %v2814_v34  ;;  %v2813_v36 = vmul.f32 0.03125, %v2811_v35 }
0x19bc   :  { %v2815_v37 = vadd.f32 1e-05, %v2813_v36 }
0x19be   :  { %3989 = vrsqrt.f32 %v2815_v37 }
0x19c4   :  { %v3988_v38 = vpop.eup %3987 }
0x19c5   :  { %v2818_v28 = vmul.f32 %v3988_v38, %v2802_v57 }
0x19c7   :  { %v2826_v41 = vmul.f32 %v3187_v39, %v2818_v28 }
0x19c8   :  { %v3990_v27 = vpop.eup %3989 }
0x19c9   :  { %v2819_v42 = vmul.f32 %v3990_v27, %v4514_v10  ;;  %v2834_v29 = vadd.f32 %v3188_v40, %v2826_v41 }
0x19cb   :  { %v2827_v43 = vmul.f32 %v3187_v39, %v2819_v42  ;;  %3595 = vmatprep.mubr.msk.f32.mxu1 %vm53_vm0, %v2834_v29 }
0x19cd   :  { %v2835_v44 = vadd.f32 %v3188_v40, %v2827_v43 }
0x19cf   :  { %3596 = vmatmul.mubr.msk.f32.vlgmr.msra.gmra.mrb[30].mxu1 %vm53_vm0, %v2835_v44 }
0x1aa2   :  { %v3597_v14 = vpop.f32.mrb[30].mxu1 }
0x1aa3   :  { %v2927_v49 = vadd.f32 %v3597_v14, %v3194_v48  ;;  %v2921_v50 = vpop.f32.mrb[31].mxu1 }
0x1aa4   :  { %v2922_v51 = vadd.f32 %v3194_v48, %v2921_v50 }
0x1aa5   :  { %v2931_v5 = vmax.f32 %v2927_v49, 0.0 }
0x1aa6   :  { %v2930_v7 = vmax.f32 %v2922_v51, 0.0 }
0x1aa8   :  { %3630 = vmatprep.mubr.f32.mxu0 %v2930_v7 }
0x1aa9   :  { %3631 = vmatmul.mubr.f32.vlgmr.msra.gmra.mrb[14].mxu0 %v2931_v5 }
0x1b7c   :  { %v3632_v53 = vpop.f32.mrb[14].mxu0 }
0x1b7d   :  { %v3023_v54 = vpop.f32.mrb[15].mxu0  ;;  %v3029_v55 = vadd.f32 %v3632_v53, %v3214_v52 }
0x1b7e   :  { %v3024_v56 = vadd.f32 %v3214_v52, %v3023_v54 }
0x1b7f   :  { %v3033_v58 = vadd.f32 %v3029_v55, %v2835_v44 }
0x1b80   :  { %v3032_v10 = vadd.f32 %v3024_v56, %v2834_v29 }
0x1b81   :  { %v3041_v59 = vsel %vm53_vm0, %v3033_v58, 0.0 }
0x1b82   :  { %v3038_v57 = vsel %vm53_vm0, %v3032_v10, 0.0 }
0x1b83   :  { %3039 = vadd.xlane.f32.xlu0 %v3038_v57 }
0x1b87   :  { %3042 = vadd.xlane.f32.xlu0 %v3041_v59 }
0x1c10   :  { %v3040_v26 = vpop.xlane.xlu0 %3039 }
0x1c11   :  { %v3044_v24 = vmul.f32 0.03125, %v3040_v26 }
0x1c13   :  { %v3046_v60 = vsub.f32 %v3032_v10, %v3044_v24 }
0x1c14   :  { %v3043_v61 = vpop.xlane.xlu0 %3042 }
0x1c15   :  { %v3045_v63 = vmul.f32 0.03125, %v3043_v61  ;;  %v3048_v0 = vmul.f32 %v3046_v60, %v3046_v60 }
0x1c17   :  { %v3047_v62 = vsub.f32 %v3033_v58, %v3045_v63  ;;  %v3050_v1 = vsel %vm53_vm0, %v3048_v0, 0.0 }
0x1c18   :  { %3051 = vadd.xlane.f32.xlu0 %v3050_v1 }
0x1c19   :  { %v3049_v2 = vmul.f32 %v3047_v62, %v3047_v62 }
0x1c1b   :  { %v3053_v3 = vsel %vm53_vm0, %v3049_v2, 0.0 }
0x1c1c   :  { %3054 = vadd.xlane.f32.xlu1 %v3053_v3 }
0x1ca5   :  { %v3052_v4 = vpop.xlane.xlu0 %3051 }
0x1ca6   :  { %v3056_v6 = vmul.f32 0.03125, %v3052_v4 }
0x1ca8   :  { %v3058_v11 = vadd.f32 1e-05, %v3056_v6 }
0x1ca9   :  { %v3055_v12 = vpop.xlane.xlu1 %3054 }
0x1caa   :  { %3991 = vrsqrt.f32 %v3058_v11  ;;  %v3057_v9 = vmul.f32 0.03125, %v3055_v12 }
0x1cac   :  { %v3059_v13 = vadd.f32 1e-05, %v3057_v9 }
0x1cae   :  { %3993 = vrsqrt.f32 %v3059_v13 }
0x1cb4   :  { %v3992_v16 = vpop.eup %3991 }
0x1cb5   :  { %v3062_v18 = vmul.f32 %v3992_v16, %v3046_v60 }
0x1cb7   :  { %v3070_v19 = vmul.f32 %v3217_v15, %v3062_v18 }
0x1cb8   :  { %v3994_v20 = vpop.eup %3993 }
0x1cb9   :  { %v3063_v21 = vmul.f32 %v3994_v20, %v3047_v62  ;;  %v3078_v22 = vadd.f32 %v3218_v17, %v3070_v19 }
0x1cbb   :  { %v3071_v23 = vmul.f32 %v3217_v15, %v3063_v21  ;;  %3080 = vst.msk [vmem:[#allocation2] sm:$0xff] %vm53_vm0, %v3078_v22 }
0x1cbd   :  { %v3079_v25 = vadd.f32 %v3218_v17, %v3071_v23 }
0x1cbf   :  { %3081 = vst.msk [vmem:[#allocation2 + $0x8] sm:$0xff] %vm53_vm0, %v3079_v25 }
0x1cc0   :  { %4008 = shalt.err (!%p4005_p4)
}
0x1cc1   :  { %s4009_s21 = scalar_lea.hbm %s4632_s13, 256 }
0x1cc2   :  { %p4010_p5 = scmp.ne.s32.totalorder %s4632_s13, %s4009_s21  ;;  %p4013_p6 = scmp.lt.u32.totalorder %s4009_s21, %s4632_s13 }
0x1cc4   :  { %p4015_p7 = pnand %p4013_p6, %p4010_p5 }
0x1cc6   :  { %4018 = shalt.err (!%p4015_p7)
}
0x1cc7   :  { %s4033_s26 = smov 128   ;;  %s4034_s27 = smov 8  }
0x1cc8   :  { %3093 = dma.vmem_to_hbm [thread:$0]  %s3088_s17, 256, %s4632_s13, [#allocation3], %s4033_s26, %s4033_s26, %s4034_s27  }
0x1cc9   :  { %4019 = dma.done.wait [#allocation3], 256  }
0x1cca   :  { %4020 = vsyncadd [#allocation3], 4294967040 }
0x1ccb   :  { %3097 = vsyncpa [#allocation3], 1 }

</bundles_post_ra>
